<compile_context>
chip_gen: v6e
topology: v6e:2x2x1
jax: 0.10.0
libtpu: 0.0.40
codegen_flags: <defaults>
</compile_context>

<pallas_src>
import functools

import jax
import jax.numpy as jnp
from jax import lax
from jax.experimental import pallas as pl
from jax.experimental.pallas import tpu as pltpu

LN_EPS = 1e-5

_BUFFERED_CONST_SUPPORTED = None       # resolved eagerly in __main__ (outside any trace)


# ---------------------------------------------------------------------------
# hardware-aware budgets
# ---------------------------------------------------------------------------
def _detect_tpu():
    """(vmem_capacity_bytes, num_tensorcores_per_chip) with safe fallbacks."""
    vmem = 64 * 1024 * 1024            # conservative fallback (v7x per-TC)
    num_tc = 1
    try:
        info = pltpu.get_tpu_info()
        vmem = int(getattr(info, "vmem_capacity_bytes", vmem))
    except Exception:
        pass
    try:
        kind = jax.devices()[0].device_kind.lower()
        if "v7" in kind or "7x" in kind or "v4" in kind:
            num_tc = 2                 # megacore: 2 TensorCores share the grid
    except Exception:
        pass
    return vmem, num_tc


_VMEM_CAPACITY, _NUM_TENSORCORES = _detect_tpu()
_VMEM_LIMIT_BYTES = max(32 * 1024 * 1024, int(0.75 * _VMEM_CAPACITY))


# ---------------------------------------------------------------------------
# helpers
# ---------------------------------------------------------------------------
def _round_up(x, m):
    return ((x + m - 1) // m) * m


def _pick_tm(n_rows, bytes_per_row, const_bytes, target=2048):
    """Row-tile size: multiple of 8 sublanes, sized against the chip's VMEM
    budget net of the resident constant blocks; split into >=2 programs only
    when multiple TensorCores can actually shard the grid."""
    const_factor = 1 if _BUFFERED_CONST_SUPPORTED else 2
    budget = _VMEM_LIMIT_BYTES - const_factor * const_bytes - (2 << 20)
    budget = max(budget, 1 << 20)
    cap = max(8, budget // (2 * max(bytes_per_row, 1)))   # double-buffered tiles
    tm = min(target, cap, n_rows)
    if _NUM_TENSORCORES > 1 and n_rows >= 16:
        tm = min(tm, _round_up(pl.cdiv(n_rows, _NUM_TENSORCORES), 8))
    tm = max(8, (tm // 8) * 8)
    return min(tm, n_rows)


def _probe_buffered_const():
    """Check whether BlockSpec(pipeline_mode=pl.Buffered(1)) works on this JAX/TPU."""
    def _copy(x_ref, o_ref):
        o_ref[...] = x_ref[...] + 1.0

    try:
        out = pl.pallas_call(
            _copy,
            out_shape=jax.ShapeDtypeStruct((16, 128), jnp.float32),
            grid=(2,),
            in_specs=[pl.BlockSpec((8, 128), lambda i: (0, 0),
                                   pipeline_mode=pl.Buffered(1))],
            out_specs=pl.BlockSpec((8, 128), lambda i: (i, 0)),
        )(jnp.zeros((8, 128), jnp.float32))
        jax.block_until_ready(out)
        return True
    except Exception:   # any failure -> fall back to default double buffering
        return False


def _const_spec(shape):
    """Grid-invariant block (weights / LN params); single-buffered when supported."""
    index_map = lambda i: (0,) * len(shape)
    if _BUFFERED_CONST_SUPPORTED:
        return pl.BlockSpec(shape, index_map, pipeline_mode=pl.Buffered(1))
    return pl.BlockSpec(shape, index_map)


def _row_tiled_call(kernel, x, consts, out_cols_list, *, flops, transcendentals,
                    tm_target=2048):
    """Run `kernel` over row tiles of x:(M, K); `consts` stay fully resident.
    Supports one or two (M, out_cols) f32 outputs."""
    M, K = x.shape
    bytes_per_row = K * x.dtype.itemsize + sum(oc * 4 for oc in out_cols_list)
    const_bytes = sum(int(c.size) * c.dtype.itemsize for c in consts)
    tm = _pick_tm(M, bytes_per_row, const_bytes, tm_target)
    grid = (pl.cdiv(M, tm),)

    bytes_accessed = (x.size * x.dtype.itemsize + const_bytes
                      + M * sum(out_cols_list) * 4)

    out_shapes = tuple(jax.ShapeDtypeStruct((M, oc), jnp.float32)
                       for oc in out_cols_list)
    out_specs = tuple(pl.BlockSpec((tm, oc), lambda i: (i, 0))
                      for oc in out_cols_list)
    single = len(out_cols_list) == 1

    # TODO(synk): for very large stage dims (8C x 2C bf16 weight > ~16 MiB) add
    # an N/K-tiled variant with an f32 accumulator so the weight is not fully
    # resident in VMEM on 64 MiB-VMEM chips.
    return pl.pallas_call(
        kernel,
        out_shape=out_shapes[0] if single else out_shapes,
        grid_spec=pltpu.PrefetchScalarGridSpec(
            num_scalar_prefetch=0,
            grid=grid,
            in_specs=[pl.BlockSpec((tm, K), lambda i: (i, 0))]
                     + [_const_spec(c.shape) for c in consts],
            out_specs=out_specs[0] if single else out_specs,
        ),
        compiler_params=pltpu.CompilerParams(
            dimension_semantics=("parallel",),
            vmem_limit_bytes=_VMEM_LIMIT_BYTES,
        ),
        cost_estimate=pl.CostEstimate(
            flops=int(flops),
            transcendentals=int(transcendentals),
            bytes_accessed=int(bytes_accessed),
        ),
    )(x, *consts)


def _layer_norm(h, gamma, beta):
    mu = jnp.mean(h, axis=-1, keepdims=True)
    c = h - mu
    var = jnp.mean(c * c, axis=-1, keepdims=True)
    return (c * lax.rsqrt(var + LN_EPS)) * gamma + beta


# ---------------------------------------------------------------------------
# kernels
# ---------------------------------------------------------------------------
def _proj_bias_ln_kernel(x_ref, w_ref, c_ref, o_ref):
    """(x @ W + b) followed by LayerNorm  (PatchEmbed projection + patch_norm).
    c_ref rows: [bias, gamma, beta]."""
    h = jnp.dot(x_ref[...], w_ref[...], preferred_element_type=jnp.float32)
    h = h + c_ref[0:1, :]
    o_ref[...] = _layer_norm(h, c_ref[1:2, :], c_ref[2:3, :]).astype(o_ref.dtype)


def _proj_bias_ln_out_kernel(x_ref, w_ref, c_ref, oc_ref, o_ref, xo_ref):
    """Same as above, plus the fused per-stage output LayerNorm (2nd output).
    oc_ref rows: [out_gamma, out_beta]."""
    h = jnp.dot(x_ref[...], w_ref[...], preferred_element_type=jnp.float32)
    h = h + c_ref[0:1, :]
    tok = _layer_norm(h, c_ref[1:2, :], c_ref[2:3, :])
    o_ref[...] = tok.astype(o_ref.dtype)
    xo_ref[...] = _layer_norm(tok, oc_ref[0:1, :], oc_ref[1:2, :]).astype(xo_ref.dtype)


def _ln_proj_kernel(x_ref, c_ref, w_ref, o_ref):
    """LayerNorm followed by a bias-free Linear  (PatchMerging).
    c_ref rows: [gamma, beta]."""
    xn = _layer_norm(x_ref[...].astype(jnp.float32), c_ref[0:1, :], c_ref[1:2, :])
    o_ref[...] = jnp.dot(xn.astype(w_ref.dtype), w_ref[...],
                         preferred_element_type=jnp.float32).astype(o_ref.dtype)


def _ln_proj_out_kernel(x_ref, c_ref, w_ref, oc_ref, o_ref, xo_ref):
    """PatchMerging plus the fused per-stage output LayerNorm (2nd output)."""
    xn = _layer_norm(x_ref[...].astype(jnp.float32), c_ref[0:1, :], c_ref[1:2, :])
    red = jnp.dot(xn.astype(w_ref.dtype), w_ref[...],
                  preferred_element_type=jnp.float32)
    o_ref[...] = red.astype(o_ref.dtype)
    xo_ref[...] = _layer_norm(red, oc_ref[0:1, :], oc_ref[1:2, :]).astype(xo_ref.dtype)


# ---------------------------------------------------------------------------
# module pieces
# ---------------------------------------------------------------------------
def patch_embed_forward(x, p, patch_size, embed_dim, out_norm=None):
    """Conv3d(kernel=stride=patch_size) + LayerNorm == patch-extract (layout
    plumbing in XLA) + fused Pallas (matmul + bias + LayerNorm [+ out-norm])."""
    B, Cin, H, W, T = x.shape
    p0, p1, p2 = patch_size
    pad = ((0, 0), (0, 0), (0, (-H) % p0), (0, (-W) % p1), (0, (-T) % p2))
    if any(hi for _, hi in pad):
        x = jnp.pad(x, pad)
        _, _, H, W, T = x.shape
    nH, nW, nT = H // p0, W // p1, T // p2
    xp = x.reshape(B, Cin, nH, p0, nW, p1, nT, p2)
    xp = jnp.transpose(xp, (0, 2, 4, 6, 1, 3, 5, 7))     # (B,nH,nW,nT,Cin,p0,p1,p2)
    x2 = xp.reshape(B * nH * nW * nT, Cin * p0 * p1 * p2).astype(jnp.bfloat16)

    K = x2.shape[1]
    K_pad = p["w"].shape[0]                               # weight pre-padded at init
    if K_pad != K:
        x2 = jnp.pad(x2, ((0, 0), (0, K_pad - K)))        # zero-pad contraction dim

    M = x2.shape[0]
    flops = 2 * M * K_pad * embed_dim + 10 * M * embed_dim
    if out_norm is not None:
        tok, xo = _row_tiled_call(
            _proj_bias_ln_out_kernel, x2, (p["w"], p["ln"], out_norm),
            [embed_dim, embed_dim],
            flops=flops + 8 * M * embed_dim, transcendentals=2 * M)
        xo = xo.reshape(B, nH * nW * nT, embed_dim)
    else:
        tok = _row_tiled_call(
            _proj_bias_ln_kernel, x2, (p["w"], p["ln"]), [embed_dim],
            flops=flops, transcendentals=M)
        xo = None
    return tok.reshape(B, nH * nW * nT, embed_dim), xo, (nH, nW, nT)


def _merge_tokens(x, H, W, T):
    """PatchMerging's 2x2x2 neighborhood concat (layout plumbing, done in XLA)."""
    # TODO(synk): move this gather into the merging Pallas call (strided DMA /
    # multi-BlockSpec) to avoid the XLA-side materialization of the 8C activation.
    B, L, C = x.shape
    x5 = x.reshape(B, H, W, T, C)
    parts = [x5[:, 0::2, 0::2, 0::2, :], x5[:, 1::2, 0::2, 0::2, :],
             x5[:, 0::2, 1::2, 0::2, :], x5[:, 0::2, 0::2, 1::2, :],
             x5[:, 1::2, 1::2, 0::2, :], x5[:, 0::2, 1::2, 1::2, :],
             x5[:, 1::2, 0::2, 1::2, :], x5[:, 1::2, 1::2, 1::2, :]]
    xm = jnp.concatenate(parts, axis=-1)
    return xm.reshape(B * (H // 2) * (W // 2) * (T // 2), 8 * C)


def patch_merging_forward(x, H, W, T, p, out_norm=None):
    B, L, C = x.shape
    xm = _merge_tokens(x, H, W, T)
    M = xm.shape[0]
    out_cols = p["w"].shape[1]
    flops = 2 * M * 8 * C * out_cols + 10 * M * 8 * C
    if out_norm is not None:
        y, xo = _row_tiled_call(
            _ln_proj_out_kernel, xm, (p["ln"], p["w"], out_norm),
            [out_cols, out_cols],
            flops=flops + 8 * M * out_cols, transcendentals=2 * M)
        xo = xo.reshape(B, M // B, out_cols)
    else:
        y = _row_tiled_call(
            _ln_proj_kernel, xm, (p["ln"], p["w"]), [out_cols],
            flops=flops, transcendentals=M)
        xo = None
    return y.reshape(B, M // B, out_cols), xo


def mamba_block_forward(x, params, config):
    """MambaBlock.forward with ape=False, spe=False, drop_rate=0.0."""
    patch_size = config["patch_size"]
    embed_dim = config["embed_dim"]
    num_layers = config["num_layers"]
    out_indices = config["out_indices"]
    B = x.shape[0]

    on = lambda i: params["out_norm"][i] if i in out_indices else None

    tok, xo, (Wh, Ww, Wt) = patch_embed_forward(
        x, params["patch_embed"], patch_size, embed_dim, out_norm=on(0))
    # flatten(2).transpose(1,2) token order already matches; pos_drop(p=0) is identity.

    outs = []
    for i in range(num_layers):
        H, W, T = Wh, Ww, Wt
        # TODO(synk): MambaLayer's Mamba SSM core (causal conv1d + SiLU gating +
        # selective scan) is not defined in the provided source; tokens pass
        # through it unchanged here.
        x_out_norm = xo          # fused out_norm(i) produced by the previous kernel
        if i < num_layers - 1:
            tok, xo = patch_merging_forward(tok, H, W, T, params["merge"][i],
                                            out_norm=on(i + 1))
            Wh, Ww, Wt = H // 2, W // 2, T // 2
        if i in out_indices:
            C_i = x_out_norm.shape[-1]
            outs.append(jnp.transpose(x_out_norm.reshape(B, H, W, T, C_i),
                                      (0, 4, 1, 2, 3)))
    return outs


# ---------------------------------------------------------------------------
# params / reference
# ---------------------------------------------------------------------------
def init_params(key, config):
    p0, p1, p2 = config["patch_size"]
    Cin = config["in_chans"]
    C = config["embed_dim"]
    nl = config["num_layers"]
    K = Cin * p0 * p1 * p2
    K_pad = _round_up(K, 128)
    keys = iter(jax.random.split(key, 64))

    def nrm(shape, scale=0.02):
        return (scale * jax.random.normal(next(keys), shape)).astype(jnp.float32)

    # Conv3d weight, flattened (cin,p0,p1,p2)->K and transposed; K zero-padded to
    # a multiple of 128 and pre-cast to bf16 (once, at init).
    w_pe = jnp.pad(nrm((K, C)), ((0, K_pad - K), (0, 0))).astype(jnp.bfloat16)
    params = {
        "patch_embed": dict(
            w=w_pe,
            ln=jnp.concatenate([nrm((1, C), 0.1),            # bias
                                1.0 + nrm((1, C), 0.1),      # gamma
                                nrm((1, C), 0.1)], axis=0),  # beta   -> (3, C)
        ),
    }
    dims = [C * (2 ** i) for i in range(nl)]
    # MambaLayer's code is not in the spec; TransMorph builds its PatchMerging
    # with reduce_factor=4 (8*dim -> 2*dim) so stage dims double, which keeps
    # num_features[i] = embed_dim * 2**i consistent — we follow that.
    params["merge"] = [dict(
        ln=jnp.concatenate([1.0 + nrm((1, 8 * d), 0.1),
                            nrm((1, 8 * d), 0.1)], axis=0),  # (2, 8d)
        w=nrm((8 * d, 2 * d)).astype(jnp.bfloat16),          # pre-cast bf16
    ) for d in dims[:-1]]
    params["out_norm"] = [jnp.concatenate([1.0 + nrm((1, d), 0.1),
                                           nrm((1, d), 0.1)], axis=0)   # (2, d)
                          for d in dims]
    return params


def _ln_ref(x, g, b):
    x = x.astype(jnp.float32)
    mu = jnp.mean(x, axis=-1, keepdims=True)
    var = jnp.mean((x - mu) ** 2, axis=-1, keepdims=True)
    return (x - mu) * lax.rsqrt(var + LN_EPS) * g + b


def mamba_block_reference(x, params, config):
    """Pure-JAX reference using the same operand dtypes (bf16 matmul, f32 accum)."""
    p0, p1, p2 = config["patch_size"]
    C = config["embed_dim"]
    nl = config["num_layers"]
    B, Cin, H, W, T = x.shape
    nH, nW, nT = H // p0, W // p1, T // p2
    xp = jnp.transpose(x.reshape(B, Cin, nH, p0, nW, p1, nT, p2),
                       (0, 2, 4, 6, 1, 3, 5, 7))
    x2 = xp.reshape(B * nH * nW * nT, Cin * p0 * p1 * p2).astype(jnp.bfloat16)
    pe = params["patch_embed"]
    K_pad = pe["w"].shape[0]
    x2 = jnp.pad(x2, ((0, 0), (0, K_pad - x2.shape[1])))
    h = jnp.dot(x2, pe["w"], preferred_element_type=jnp.float32) + pe["ln"][0:1]
    tok = _ln_ref(h, pe["ln"][1:2], pe["ln"][2:3]).reshape(B, nH * nW * nT, C)
    Wh, Ww, Wt = nH, nW, nT
    outs = []
    for i in range(nl):
        Hs, Ws, Ts = Wh, Ww, Wt
        x_out = tok
        if i < nl - 1:
            mp = params["merge"][i]
            xm = _merge_tokens(x_out, Hs, Ws, Ts)
            xn = _ln_ref(xm, mp["ln"][0:1], mp["ln"][1:2])
            red = jnp.dot(xn.astype(jnp.bfloat16), mp["w"],
                          preferred_element_type=jnp.float32)
            tok = red.reshape(B, -1, red.shape[-1])
            Wh, Ww, Wt = Hs // 2, Ws // 2, Ts // 2
        if i in config["out_indices"]:
            onp = params["out_norm"][i]
            Ci = x_out.shape[-1]
            xo = _ln_ref(x_out.reshape(-1, Ci), onp[0:1], onp[1:2])
            outs.append(jnp.transpose(xo.reshape(B, Hs, Ws, Ts, Ci), (0, 4, 1, 2, 3)))
    return outs


# ---------------------------------------------------------------------------
if __name__ == "__main__":
    # Resolve (eagerly, outside any trace) whether single-buffered constant
    # blocks via pipeline_mode=pl.Buffered(1) are supported on this install.
    _BUFFERED_CONST_SUPPORTED = _probe_buffered_const()

    config = dict(
        patch_size=(4, 4, 4),
        in_chans=3,
        embed_dim=128,          # lane-dense (multiple of 128) feature dims
        num_layers=2,           # == len(depths) for a small depths=[2, 2] demo
        out_indices=(0, 1),
    )

    key = jax.random.PRNGKey(0)
    k_in, k_par = jax.random.split(key)
    B, H, W, T = 2, 16, 16, 16
    x = jax.random.normal(k_in, (B, config["in_chans"], H, W, T), dtype=jnp.float32)
    params = init_params(k_par, config)

    fwd = jax.jit(functools.partial(mamba_block_forward, config=config))
    outs = fwd(x, params)
    jax.block_until_ready(outs)

    # stage-i output: (B, embed_dim * 2**i, H/(4*2**i), W/(4*2**i), T/(4*2**i))
    assert outs[0].shape == (B, 128, 4, 4, 4), outs[0].shape
    assert outs[1].shape == (B, 256, 2, 2, 2), outs[1].shape

    refs = mamba_block_reference(x, params, config)
    assert len(outs) == len(refs)
    for o, r in zip(outs, refs):
        assert o.shape == r.shape
        assert bool(jnp.all(jnp.isfinite(o)))
        assert jnp.allclose(o, r, atol=2e-3, rtol=2e-3), \
            float(jnp.max(jnp.abs(o - r)))

    print("KERNEL_OK")
</pallas_src>

<mosaic_0001>
module attributes {stable_mosaic.version = 11 : i64} {
  func.func @_copy(%arg0: i32, %arg1: memref<8x128xf32, #tpu.memory_space<vmem>>, %arg2: memref<8x128xf32, #tpu.memory_space<vmem>>) attributes {dimension_semantics = [#tpu.dimension_semantics<arbitrary>], iteration_bounds = array<i64: 2>, scalar_prefetch = 0 : i64, scratch_operands = 0 : i64, tpu.core_type = #tpu.core_type<tc>, window_params = [{pipeline_mode = #tpu.pipeline_mode<synchronous>, transform_indices = @transform_0, window_bounds = array<i64: 8, 128>}, {transform_indices = @transform_1, window_bounds = array<i64: 8, 128>}]} {
    %c0 = arith.constant 0 : index
    %c0_0 = arith.constant 0 : index
    %0 = vector.load %arg1[%c0, %c0_0] : memref<8x128xf32, #tpu.memory_space<vmem>>, vector<8x128xf32>
    %cst = arith.constant 1.000000e+00 : f32
    %1 = vector.broadcast %cst : f32 to vector<8x128xf32>
    %2 = arith.addf %0, %1 : vector<8x128xf32>
    %c0_1 = arith.constant 0 : index
    %c0_2 = arith.constant 0 : index
    %3 = vector.load %arg2[%c0_1, %c0_2] : memref<8x128xf32, #tpu.memory_space<vmem>>, vector<8x128xf32>
    tpu.vector_store %arg2[%c0_1, %c0_2], %2 {strides = array<i32>} : memref<8x128xf32, #tpu.memory_space<vmem>>, vector<8x128xf32>,
    return
  }
  func.func @transform_0(%arg0: i32) -> (i32, i32) {
    %c0_i32 = arith.constant 0 : i32
    %c0_i32_0 = arith.constant 0 : i32
    %c0_i32_1 = arith.constant 0 : i32
    return %c0_i32, %c0_i32_0 : i32, i32
  }
  func.func @transform_1(%arg0: i32) -> (i32, i32) {
    %c0_i32 = arith.constant 0 : i32
    %c0_i32_0 = arith.constant 0 : i32
    return %arg0, %c0_i32 : i32, i32
  }
}

module attributes {stable_mosaic.version = 11 : i64} {
  func.func @_proj_bias_ln_out_kernel(%arg0: i32, %arg1: memref<128x256xbf16, #tpu.memory_space<vmem>>, %arg2: memref<256x128xbf16, #tpu.memory_space<vmem>>, %arg3: memref<3x128xf32, #tpu.memory_space<vmem>>, %arg4: memref<2x128xf32, #tpu.memory_space<vmem>>, %arg5: memref<128x128xf32, #tpu.memory_space<vmem>>, %arg6: memref<128x128xf32, #tpu.memory_space<vmem>>) attributes {dimension_semantics = [#tpu.dimension_semantics<parallel>], iteration_bounds = array<i64: 1>, scalar_prefetch = 0 : i64, scratch_operands = 0 : i64, tpu.core_type = #tpu.core_type<tc>, window_params = [{transform_indices = @transform_0, window_bounds = array<i64: 128, 256>}, {pipeline_mode = #tpu.pipeline_mode<synchronous>, transform_indices = @transform_1, window_bounds = array<i64: 256, 128>}, {pipeline_mode = #tpu.pipeline_mode<synchronous>, transform_indices = @transform_2, window_bounds = array<i64: 3, 128>}, {pipeline_mode = #tpu.pipeline_mode<synchronous>, transform_indices = @transform_3, window_bounds = array<i64: 2, 128>}, {transform_indices = @transform_4, window_bounds = array<i64: 128, 128>}, {transform_indices = @transform_5, window_bounds = array<i64: 128, 128>}]} {
    %c0 = arith.constant 0 : index
    %c0_0 = arith.constant 0 : index
    %0 = vector.load %arg1[%c0, %c0_0] : memref<128x256xbf16, #tpu.memory_space<vmem>>, vector<128x256xbf16>
    %c0_1 = arith.constant 0 : index
    %c0_2 = arith.constant 0 : index
    %1 = vector.load %arg2[%c0_1, %c0_2] : memref<256x128xbf16, #tpu.memory_space<vmem>>, vector<256x128xbf16>
    %cst = arith.constant dense<0.000000e+00> : vector<128x128xf32>
    %2 = tpu.matmul %0, %1, %cst {dimension_numbers = #tpu.dot_dimension_numbers<[1], [0], [0], [1], [0, 0, 1, 1], [], []>} : vector<128x256xbf16>, vector<256x128xbf16>, vector<128x128xf32> -> vector<128x128xf32>
    %c0_3 = arith.constant 0 : index
    %c0_4 = arith.constant 0 : index
    %3 = vector.load %arg3[%c0_3, %c0_4] : memref<3x128xf32, #tpu.memory_space<vmem>>, vector<1x128xf32>
    %4 = vector.broadcast %3 : vector<1x128xf32> to vector<128x128xf32>
    %5 = arith.addf %2, %4 : vector<128x128xf32>
    %c1 = arith.constant 1 : index
    %c0_5 = arith.constant 0 : index
    %6 = vector.load %arg3[%c1, %c0_5] : memref<3x128xf32, #tpu.memory_space<vmem>>, vector<1x128xf32>
    %c2 = arith.constant 2 : index
    %c0_6 = arith.constant 0 : index
    %7 = vector.load %arg3[%c2, %c0_6] : memref<3x128xf32, #tpu.memory_space<vmem>>, vector<1x128xf32>
    %cst_7 = arith.constant dense<0.000000e+00> : vector<128xf32>
    %8 = vector.multi_reduction <add>, %5, %cst_7 [1] : vector<128x128xf32> to vector<128xf32>
    %9 = vector.shape_cast %8 : vector<128xf32> to vector<128x1xf32>
    %cst_8 = arith.constant 1.280000e+02 : f32
    %10 = vector.broadcast %cst_8 : f32 to vector<128x1xf32>
    %11 = arith.divf %9, %10 : vector<128x1xf32>
    %12 = vector.broadcast %11 : vector<128x1xf32> to vector<128x128xf32>
    %13 = arith.subf %5, %12 : vector<128x128xf32>
    %14 = arith.mulf %13, %13 : vector<128x128xf32>
    %cst_9 = arith.constant dense<0.000000e+00> : vector<128xf32>
    %15 = vector.multi_reduction <add>, %14, %cst_9 [1] : vector<128x128xf32> to vector<128xf32>
    %16 = vector.shape_cast %15 : vector<128xf32> to vector<128x1xf32>
    %cst_10 = arith.constant 1.280000e+02 : f32
    %17 = vector.broadcast %cst_10 : f32 to vector<128x1xf32>
    %18 = arith.divf %16, %17 : vector<128x1xf32>
    %cst_11 = arith.constant 9.99999974E-6 : f32
    %19 = vector.broadcast %cst_11 : f32 to vector<128x1xf32>
    %20 = arith.addf %18, %19 : vector<128x1xf32>
    %21 = math.rsqrt %20 : vector<128x1xf32>
    %22 = vector.broadcast %21 : vector<128x1xf32> to vector<128x128xf32>
    %23 = arith.mulf %13, %22 : vector<128x128xf32>
    %24 = vector.broadcast %6 : vector<1x128xf32> to vector<128x128xf32>
    %25 = arith.mulf %23, %24 : vector<128x128xf32>
    %26 = vector.broadcast %7 : vector<1x128xf32> to vector<128x128xf32>
    %27 = arith.addf %25, %26 : vector<128x128xf32>
    %c0_12 = arith.constant 0 : index
    %c0_13 = arith.constant 0 : index
    %28 = vector.load %arg5[%c0_12, %c0_13] : memref<128x128xf32, #tpu.memory_space<vmem>>, vector<128x128xf32>
    tpu.vector_store %arg5[%c0_12, %c0_13], %27 {strides = array<i32>} : memref<128x128xf32, #tpu.memory_space<vmem>>, vector<128x128xf32>,
    %c0_14 = arith.constant 0 : index
    %c0_15 = arith.constant 0 : index
    %29 = vector.load %arg4[%c0_14, %c0_15] : memref<2x128xf32, #tpu.memory_space<vmem>>, vector<1x128xf32>
    %c1_16 = arith.constant 1 : index
    %c0_17 = arith.constant 0 : index
    %30 = vector.load %arg4[%c1_16, %c0_17] : memref<2x128xf32, #tpu.memory_space<vmem>>, vector<1x128xf32>
    %cst_18 = arith.constant dense<0.000000e+00> : vector<128xf32>
    %31 = vector.multi_reduction <add>, %27, %cst_18 [1] : vector<128x128xf32> to vector<128xf32>
    %32 = vector.shape_cast %31 : vector<128xf32> to vector<128x1xf32>
    %cst_19 = arith.constant 1.280000e+02 : f32
    %33 = vector.broadcast %cst_19 : f32 to vector<128x1xf32>
    %34 = arith.divf %32, %33 : vector<128x1xf32>
    %35 = vector.broadcast %34 : vector<128x1xf32> to vector<128x128xf32>
    %36 = arith.subf %27, %35 : vector<128x128xf32>
    %37 = arith.mulf %36, %36 : vector<128x128xf32>
    %cst_20 = arith.constant dense<0.000000e+00> : vector<128xf32>
    %38 = vector.multi_reduction <add>, %37, %cst_20 [1] : vector<128x128xf32> to vector<128xf32>
    %39 = vector.shape_cast %38 : vector<128xf32> to vector<128x1xf32>
    %cst_21 = arith.constant 1.280000e+02 : f32
    %40 = vector.broadcast %cst_21 : f32 to vector<128x1xf32>
    %41 = arith.divf %39, %40 : vector<128x1xf32>
    %cst_22 = arith.constant 9.99999974E-6 : f32
    %42 = vector.broadcast %cst_22 : f32 to vector<128x1xf32>
    %43 = arith.addf %41, %42 : vector<128x1xf32>
    %44 = math.rsqrt %43 : vector<128x1xf32>
    %45 = vector.broadcast %44 : vector<128x1xf32> to vector<128x128xf32>
    %46 = arith.mulf %36, %45 : vector<128x128xf32>
    %47 = vector.broadcast %29 : vector<1x128xf32> to vector<128x128xf32>
    %48 = arith.mulf %46, %47 : vector<128x128xf32>
    %49 = vector.broadcast %30 : vector<1x128xf32> to vector<128x128xf32>
    %50 = arith.addf %48, %49 : vector<128x128xf32>
    %c0_23 = arith.constant 0 : index
    %c0_24 = arith.constant 0 : index
    %51 = vector.load %arg6[%c0_23, %c0_24] : memref<128x128xf32, #tpu.memory_space<vmem>>, vector<128x128xf32>
    tpu.vector_store %arg6[%c0_23, %c0_24], %50 {strides = array<i32>} : memref<128x128xf32, #tpu.memory_space<vmem>>, vector<128x128xf32>,
    return
  }
  func.func @transform_0(%arg0: i32) -> (i32, i32) {
    %c0_i32 = arith.constant 0 : i32
    %c0_i32_0 = arith.constant 0 : i32
    return %arg0, %c0_i32 : i32, i32
  }
  func.func @transform_1(%arg0: i32) -> (i32, i32) {
    %c0_i32 = arith.constant 0 : i32
    %c0_i32_0 = arith.constant 0 : i32
    %c0_i32_1 = arith.constant 0 : i32
    return %c0_i32, %c0_i32_0 : i32, i32
  }
  func.func @transform_2(%arg0: i32) -> (i32, i32) {
    %c0_i32 = arith.constant 0 : i32
    %c0_i32_0 = arith.constant 0 : i32
    %c0_i32_1 = arith.constant 0 : i32
    return %c0_i32, %c0_i32_0 : i32, i32
  }
  func.func @transform_3(%arg0: i32) -> (i32, i32) {
    %c0_i32 = arith.constant 0 : i32
    %c0_i32_0 = arith.constant 0 : i32
    %c0_i32_1 = arith.constant 0 : i32
    return %c0_i32, %c0_i32_0 : i32, i32
  }
  func.func @transform_4(%arg0: i32) -> (i32, i32) {
    %c0_i32 = arith.constant 0 : i32
    %c0_i32_0 = arith.constant 0 : i32
    return %arg0, %c0_i32 : i32, i32
  }
  func.func @transform_5(%arg0: i32) -> (i32, i32) {
    %c0_i32 = arith.constant 0 : i32
    %c0_i32_0 = arith.constant 0 : i32
    return %arg0, %c0_i32 : i32, i32
  }
}

module attributes {stable_mosaic.version = 11 : i64} {
  func.func @_ln_proj_out_kernel(%arg0: i32, %arg1: memref<16x1024xf32, #tpu.memory_space<vmem>>, %arg2: memref<2x1024xf32, #tpu.memory_space<vmem>>, %arg3: memref<1024x256xbf16, #tpu.memory_space<vmem>>, %arg4: memref<2x256xf32, #tpu.memory_space<vmem>>, %arg5: memref<16x256xf32, #tpu.memory_space<vmem>>, %arg6: memref<16x256xf32, #tpu.memory_space<vmem>>) attributes {dimension_semantics = [#tpu.dimension_semantics<parallel>], iteration_bounds = array<i64: 1>, scalar_prefetch = 0 : i64, scratch_operands = 0 : i64, tpu.core_type = #tpu.core_type<tc>, window_params = [{transform_indices = @transform_0, window_bounds = array<i64: 16, 1024>}, {pipeline_mode = #tpu.pipeline_mode<synchronous>, transform_indices = @transform_1, window_bounds = array<i64: 2, 1024>}, {pipeline_mode = #tpu.pipeline_mode<synchronous>, transform_indices = @transform_2, window_bounds = array<i64: 1024, 256>}, {pipeline_mode = #tpu.pipeline_mode<synchronous>, transform_indices = @transform_3, window_bounds = array<i64: 2, 256>}, {transform_indices = @transform_4, window_bounds = array<i64: 16, 256>}, {transform_indices = @transform_5, window_bounds = array<i64: 16, 256>}]} {
    %c0 = arith.constant 0 : index
    %c0_0 = arith.constant 0 : index
    %0 = vector.load %arg1[%c0, %c0_0] : memref<16x1024xf32, #tpu.memory_space<vmem>>, vector<16x1024xf32>
    %c0_1 = arith.constant 0 : index
    %c0_2 = arith.constant 0 : index
    %1 = vector.load %arg2[%c0_1, %c0_2] : memref<2x1024xf32, #tpu.memory_space<vmem>>, vector<1x1024xf32>
    %c1 = arith.constant 1 : index
    %c0_3 = arith.constant 0 : index
    %2 = vector.load %arg2[%c1, %c0_3] : memref<2x1024xf32, #tpu.memory_space<vmem>>, vector<1x1024xf32>
    %cst = arith.constant dense<0.000000e+00> : vector<16xf32>
    %3 = vector.multi_reduction <add>, %0, %cst [1] : vector<16x1024xf32> to vector<16xf32>
    %4 = vector.shape_cast %3 : vector<16xf32> to vector<16x1xf32>
    %cst_4 = arith.constant 1.024000e+03 : f32
    %5 = vector.broadcast %cst_4 : f32 to vector<16x1xf32>
    %6 = arith.divf %4, %5 : vector<16x1xf32>
    %7 = vector.broadcast %6 : vector<16x1xf32> to vector<16x1024xf32>
    %8 = arith.subf %0, %7 : vector<16x1024xf32>
    %9 = arith.mulf %8, %8 : vector<16x1024xf32>
    %cst_5 = arith.constant dense<0.000000e+00> : vector<16xf32>
    %10 = vector.multi_reduction <add>, %9, %cst_5 [1] : vector<16x1024xf32> to vector<16xf32>
    %11 = vector.shape_cast %10 : vector<16xf32> to vector<16x1xf32>
    %cst_6 = arith.constant 1.024000e+03 : f32
    %12 = vector.broadcast %cst_6 : f32 to vector<16x1xf32>
    %13 = arith.divf %11, %12 : vector<16x1xf32>
    %cst_7 = arith.constant 9.99999974E-6 : f32
    %14 = vector.broadcast %cst_7 : f32 to vector<16x1xf32>
    %15 = arith.addf %13, %14 : vector<16x1xf32>
    %16 = math.rsqrt %15 : vector<16x1xf32>
    %17 = vector.broadcast %16 : vector<16x1xf32> to vector<16x1024xf32>
    %18 = arith.mulf %8, %17 : vector<16x1024xf32>
    %19 = vector.broadcast %1 : vector<1x1024xf32> to vector<16x1024xf32>
    %20 = arith.mulf %18, %19 : vector<16x1024xf32>
    %21 = vector.broadcast %2 : vector<1x1024xf32> to vector<16x1024xf32>
    %22 = arith.addf %20, %21 : vector<16x1024xf32>
    %23 = arith.truncf %22 : vector<16x1024xf32> to vector<16x1024xbf16>
    %c0_8 = arith.constant 0 : index
    %c0_9 = arith.constant 0 : index
    %24 = vector.load %arg3[%c0_8, %c0_9] : memref<1024x256xbf16, #tpu.memory_space<vmem>>, vector<1024x256xbf16>
    %cst_10 = arith.constant dense<0.000000e+00> : vector<16x256xf32>
    %25 = tpu.matmul %23, %24, %cst_10 {dimension_numbers = #tpu.dot_dimension_numbers<[1], [0], [0], [1], [0, 0, 1, 1], [], []>} : vector<16x1024xbf16>, vector<1024x256xbf16>, vector<16x256xf32> -> vector<16x256xf32>
    %c0_11 = arith.constant 0 : index
    %c0_12 = arith.constant 0 : index
    %26 = vector.load %arg5[%c0_11, %c0_12] : memref<16x256xf32, #tpu.memory_space<vmem>>, vector<16x256xf32>
    tpu.vector_store %arg5[%c0_11, %c0_12], %25 {strides = array<i32>} : memref<16x256xf32, #tpu.memory_space<vmem>>, vector<16x256xf32>,
    %c0_13 = arith.constant 0 : index
    %c0_14 = arith.constant 0 : index
    %27 = vector.load %arg4[%c0_13, %c0_14] : memref<2x256xf32, #tpu.memory_space<vmem>>, vector<1x256xf32>
    %c1_15 = arith.constant 1 : index
    %c0_16 = arith.constant 0 : index
    %28 = vector.load %arg4[%c1_15, %c0_16] : memref<2x256xf32, #tpu.memory_space<vmem>>, vector<1x256xf32>
    %cst_17 = arith.constant dense<0.000000e+00> : vector<16xf32>
    %29 = vector.multi_reduction <add>, %25, %cst_17 [1] : vector<16x256xf32> to vector<16xf32>
    %30 = vector.shape_cast %29 : vector<16xf32> to vector<16x1xf32>
    %cst_18 = arith.constant 2.560000e+02 : f32
    %31 = vector.broadcast %cst_18 : f32 to vector<16x1xf32>
    %32 = arith.divf %30, %31 : vector<16x1xf32>
    %33 = vector.broadcast %32 : vector<16x1xf32> to vector<16x256xf32>
    %34 = arith.subf %25, %33 : vector<16x256xf32>
    %35 = arith.mulf %34, %34 : vector<16x256xf32>
    %cst_19 = arith.constant dense<0.000000e+00> : vector<16xf32>
    %36 = vector.multi_reduction <add>, %35, %cst_19 [1] : vector<16x256xf32> to vector<16xf32>
    %37 = vector.shape_cast %36 : vector<16xf32> to vector<16x1xf32>
    %cst_20 = arith.constant 2.560000e+02 : f32
    %38 = vector.broadcast %cst_20 : f32 to vector<16x1xf32>
    %39 = arith.divf %37, %38 : vector<16x1xf32>
    %cst_21 = arith.constant 9.99999974E-6 : f32
    %40 = vector.broadcast %cst_21 : f32 to vector<16x1xf32>
    %41 = arith.addf %39, %40 : vector<16x1xf32>
    %42 = math.rsqrt %41 : vector<16x1xf32>
    %43 = vector.broadcast %42 : vector<16x1xf32> to vector<16x256xf32>
    %44 = arith.mulf %34, %43 : vector<16x256xf32>
    %45 = vector.broadcast %27 : vector<1x256xf32> to vector<16x256xf32>
    %46 = arith.mulf %44, %45 : vector<16x256xf32>
    %47 = vector.broadcast %28 : vector<1x256xf32> to vector<16x256xf32>
    %48 = arith.addf %46, %47 : vector<16x256xf32>
    %c0_22 = arith.constant 0 : index
    %c0_23 = arith.constant 0 : index
    %49 = vector.load %arg6[%c0_22, %c0_23] : memref<16x256xf32, #tpu.memory_space<vmem>>, vector<16x256xf32>
    tpu.vector_store %arg6[%c0_22, %c0_23], %48 {strides = array<i32>} : memref<16x256xf32, #tpu.memory_space<vmem>>, vector<16x256xf32>,
    return
  }
  func.func @transform_0(%arg0: i32) -> (i32, i32) {
    %c0_i32 = arith.constant 0 : i32
    %c0_i32_0 = arith.constant 0 : i32
    return %arg0, %c0_i32 : i32, i32
  }
  func.func @transform_1(%arg0: i32) -> (i32, i32) {
    %c0_i32 = arith.constant 0 : i32
    %c0_i32_0 = arith.constant 0 : i32
    %c0_i32_1 = arith.constant 0 : i32
    return %c0_i32, %c0_i32_0 : i32, i32
  }
  func.func @transform_2(%arg0: i32) -> (i32, i32) {
    %c0_i32 = arith.constant 0 : i32
    %c0_i32_0 = arith.constant 0 : i32
    %c0_i32_1 = arith.constant 0 : i32
    return %c0_i32, %c0_i32_0 : i32, i32
  }
  func.func @transform_3(%arg0: i32) -> (i32, i32) {
    %c0_i32 = arith.constant 0 : i32
    %c0_i32_0 = arith.constant 0 : i32
    %c0_i32_1 = arith.constant 0 : i32
    return %c0_i32, %c0_i32_0 : i32, i32
  }
  func.func @transform_4(%arg0: i32) -> (i32, i32) {
    %c0_i32 = arith.constant 0 : i32
    %c0_i32_0 = arith.constant 0 : i32
    return %arg0, %c0_i32 : i32, i32
  }
  func.func @transform_5(%arg0: i32) -> (i32, i32) {
    %c0_i32 = arith.constant 0 : i32
    %c0_i32_0 = arith.constant 0 : i32
    return %arg0, %c0_i32 : i32, i32
  }
}

</mosaic_0001>

<bundles_post_ra>
// kernel: tpu_custom_call.1
= control target key start
LH: loop header
LB: loop body
LE: loop exit
PB: predicated region body
PF: predicated region fallthrough
CT: control target
= control target key end

     0   :  { %6 = vsyncpa [#allocation3], 0  ;;  %s448_s0 = inlined_call_operand.hbm [shape: f32[8,128], index: 0, kind: input, shape index: {}]   ;;  %s449_s1 = inlined_call_operand.hbm [shape: f32[16,128], index: 1, kind: output, shape index: {}]  }
   0x1   :  { %7 = vsyncpa [#allocation4], 0 }
   0x2   :  { %9 = vsyncpa [#allocation4 + $0x1], 0  ;;  %s348_s6 = smov 0   ;;  %s350_s7 = smov 0  }
   0x3   :  { %s352_s8 = smov 0   ;;  %s354_s9 = smov 0  }
   0x4 LB: > { %s369_s10 = sadd.s32 4294967295, %s334_s9   ;;  %s184_s11 = sadd.s32 4294967294, %s334_s9   ;;  %s334_s9 = sphi %s354_s9, %s457_s9   ;;  %s330_s8 = sphi %s352_s8, %s456_s8   ;;  %s326_s7 = sphi %s350_s7, %s455_s7   ;;  %s322_s6 = sphi %s348_s6, %s454_s6  }
   0x5   : > { %s373_s12 = sadd.s32 1, %s334_s9   ;;  %s43_s13 = sadd.s32 1, %s330_s8 }
   0x6   : > { %s40_s14 = ssub.s32 %s334_s9, %s373_s12  ;;  %p53_p0 = scmp.ne.s32.totalorder %s330_s8, %s326_s7 }
   0x7   : > { %p41_p1 = scmp.eq.s32.totalorder %s40_s14, 0  ;;  %p54_p2 = scmp.eq.s32.totalorder %s369_s10, 1 }
   0x8   : > { %p59_p3 = scmp.ne.s32.totalorder %s326_s7, %s322_s6  ;;  %p60_p4 = scmp.eq.s32.totalorder %s184_s11, 1 }
   0x9   : > { %s384_s15 = scalar_select %p41_p1, %s330_s8, %s43_s13  }
   0xa   : > { %p386_p5 = por %p54_p2, %p53_p0  ;;  %p390_p6 = por %p60_p4, %p59_p3 }
   0xb   : > { %p185_p7 = scmp.ge.s32.totalorder %s334_s9, 1  ;;  %p67_p8 = scmp.lt.s32.totalorder %s334_s9, 3 }
   0xc   : > { %s451_s17 = scalar_select %p390_p6, 1, 0 }
   0xd   : > { %p208_p9 = scmp.eq.s32.totalorder %s369_s10, 0  ;;  %p397_p10 = pnand %p185_p7, %p67_p8 }
   0xe   : > { %s336_s19 = smov [#allocation2]  }
   0xf   : > { %s80_s20 = sshll.u32 %s336_s19, 4  ;;  %p200_p11 = pneg %p397_p10  ;;  %s81_s20 = int_to_ptr.vmem [resolvable:$true] %s80_s20 }
  0x10   : > { %s255_s21 = scalar_lea.vmem %s81_s20, 128  ;;  %p263_p3 = scmp.lt.s32.totalorder %s81_s20, %s81_s20 }
  0x11   : > { %p201_p12 = pnand %p208_p9, %p200_p11  ;;  %p256_p0 = scmp.ne.s32.totalorder %s81_s20, %s255_s21 }
  0x12   : > { %p264_p4 = scmp.lt.s32.totalorder %s255_s21, %s255_s21 }
  0x13   : > { %p246_p13 = pneg %p201_p12 }
  0x14   : > { %p265_p6 = por %p264_p4, %p263_p3 }
  0x15   : > { %p258_p1 = pnand %p256_p0, %p246_p13 }
  0x17   : > { %p259_p2 = pneg %p258_p1 }
  0x19   : > { %p266_p7 = pnand %p265_p6, %p259_p2 }
  0x1b   : > { %269 = shalt.err (!%p266_p7)
}
  0x1c   : > { %203 = dma.hbm_to_vmem [thread:$0]  (!%p201_p12), %s448_s0, 128, %s81_s20, [#allocation3]  }
  0x1d   : > { %93 = sbr.rel (%p397_p10) target bundleno = 60 (0x3c), region = 24 }
  0x22   : > { %313 = dma.done.wait (%p208_p9), [#allocation3], 128  }
  0x23   : > { %315 = vsyncadd (%p208_p9), [#allocation3], 4294967168  ;;  %s105_s24 = sand.u32 1, %s326_s7   ;;  %s191_s28 = sshll.u32 %s369_s10, 7  ;;  %v108_v0 = vld [vmem:[#allocation2] sm:$0xff] }
  0x24   : > { %s189_s25 = sshll.u32 %s105_s24, 3  ;;  %v109_v1 = vadd.f32 1.0, %v108_v0  ;;  %s123_s2 = scalar_lea.hbm %s449_s1, %s191_s28 }
  0x25   : > { %s107_s26 = scalar_lea.vmem [#allocation5], %s189_s25  ;;  %s112_s3 = scalar_lea.sflag [#allocation4], %s105_s24 }
  0x26   : > { %s125_s27 = sshll.u32 %s107_s26, 4  ;;  %110 = vst [vmem:[%s107_s26] sm:$0xff] %v109_v1  ;;  %s337_s5 = smov [#allocation5]   ;;  %s126_s27 = int_to_ptr.vmem [resolvable:$true] %s125_s27 }
  0x27   : > { %s270_s4 = scalar_lea.vmem %s126_s27, 128  ;;  %s274_s11 = sshll.u32 %s337_s5, 4  ;;  %s275_s11 = int_to_ptr.vmem [resolvable:$false] %s274_s11 }
  0x28   : > { %p271_p6 = scmp.ne.s32.totalorder %s126_s27, %s270_s4  ;;  %s276_s13 = scalar_lea.vmem %s275_s11, 256 }
  0x29   : > { %p277_p10 = scmp.lt.s32.totalorder %s126_s27, %s275_s11  ;;  %p278_p11 = scmp.lt.s32.totalorder %s276_s13, %s270_s4 }
  0x2a   : > { %p272_p8 = pnand %p271_p6, %p386_p5 }
  0x2b   : > { %p279_p12 = por %p278_p11, %p277_p10 }
  0x2c   : > { %p273_p9 = pneg %p272_p8 }
  0x2e   : > { %p280_p13 = pnand %p279_p12, %p273_p9 }
  0x30   : > { %283 = shalt.err (!%p280_p13)
}
  0x31   : > { %s284_s10 = scalar_lea.hbm %s123_s2, 128  ;;  %s288_s19 = scalar_lea.hbm %s449_s1, 256 }
  0x32   : > { %p285_p0 = scmp.ne.s32.totalorder %s123_s2, %s284_s10  ;;  %p289_p3 = scmp.lt.s32.totalorder %s123_s2, %s449_s1 }
  0x33   : > { %p290_p4 = scmp.lt.s32.totalorder %s288_s19, %s284_s10 }
  0x34   : > { %p286_p1 = pnand %p285_p0, %p386_p5 }
  0x35   : > { %p291_p7 = por %p290_p4, %p289_p3 }
  0x36   : > { %p287_p2 = pneg %p286_p1 }
  0x38   : > { %p292_p6 = pnand %p291_p7, %p287_p2 }
  0x3a   : > { %295 = shalt.err (!%p292_p6)
}
  0x3b   : > { %198 = dma.vmem_to_hbm [thread:$0]  (%p386_p5), %s126_s27, 128, %s123_s2, %s112_s3  }
  0x3c PF: > { %p210_p8 = scmp.ge.s32.totalorder %s334_s9, 2  ;;  %s137_s22 = sand.u32 1, %s322_s6  }
  0x3d   : > { %p453_p9 = scmp.ne.s32.totalorder %s451_s17, 0  ;;  %s138_s23 = scalar_lea.sflag [#allocation4], %s137_s22 }
  0x3f   : > { %p205_p10 = pnand %p210_p8, %p453_p9 }
  0x41   : > { %p206_p11 = pneg %p205_p10 }
  0x43   : > { %317 = dma.done.wait (%p206_p11), %s138_s23, 128  }
  0x44   : > { %319 = vsyncadd (%p206_p11), %s138_s23, 4294967168  ;;  %p12_p12 = scmp.ge.s32.totalorder %s373_s12, 4   ;;  %s454_s6 = smov %s326_s7 }
  0x45   : > { %s455_s7 = smov %s330_s8  ;;  %s456_s8 = smov %s384_s15 }
  0x46   : > { %s457_s9 = smov %s373_s12  ;;  %14 = sbr.rel (!%p12_p12) target bundleno = 4 (0x4), region = 61 }
  0x4b   :  { %143 = vsyncpa [#allocation3], 1 }
  0x4c   :  { %145 = vsyncpa [#allocation3 + $0x1], 1 }
  0x4d   :  { %146 = vsyncpa [#allocation4], 1 }
  0x4e   :  { %148 = vsyncpa [#allocation4 + $0x1], 1 }

// kernel: mamba_block_forward.2
= control target key start
LH: loop header
LB: loop body
LE: loop exit
PB: predicated region body
PF: predicated region fallthrough
CT: control target
= control target key end

     0   :  { %s1671_s0 = inlined_call_operand.vmem [shape: bf16[128,256], index: 0, kind: input, shape index: {}]   ;;  %s1672_s1 = inlined_call_operand.vmem [shape: bf16[256,128], index: 1, kind: input, shape index: {}]   ;;  %s1673_s2 = inlined_call_operand.vmem [shape: f32[3,128], index: 2, kind: input, shape index: {}]   ;;  %s1674_s3 = inlined_call_operand.vmem [shape: f32[2,128], index: 3, kind: input, shape index: {}]   ;;  %s1675_s4 = inlined_call_operand.vmem [shape: f32[128,128], index: 4, kind: output, shape index: {0}]   ;;  %s1676_s5 = inlined_call_operand.hbm [shape: f32[128,128], index: 5, kind: output, shape index: {1}]  }
   0x1   :  { %v956_v0 = vld [vmem:[%s1672_s1 + $0x78] sm:$0xff]   ;;  %v958_v2 = vld [vmem:[%s1672_s1 + $0x70] sm:$0xff]   ;;  %v960_v4 = vld [vmem:[%s1672_s1 + $0x68] sm:$0xff]  }
   0x2   :  { %v957_v1 = vld [vmem:[%s1672_s1 + $0x38] sm:$0xff]   ;;  %873 = vmatprep.subr.bf16.mxu0 %v956_v0  ;;  %937 = vmatprep.subr.bf16.mxu1 %v956_v0  ;;  %v959_v3 = vld [vmem:[%s1672_s1 + $0x30] sm:$0xff]   ;;  %v961_v5 = vld [vmem:[%s1672_s1 + $0x28] sm:$0xff]  }
   0x3   :  { %874 = vmatpush3.bf16.msra.mxu0 %v957_v1  ;;  %945 = vmatpush3.bf16.msra.mxu1 %v957_v1  ;;  %v962_v6 = vld [vmem:[%s1672_s1 + $0x60] sm:$0xff]   ;;  %v964_v8 = vld [vmem:[%s1672_s1 + $0x58] sm:$0xff]   ;;  %v966_v10 = vld [vmem:[%s1672_s1 + $0x50] sm:$0xff]  }
   0x4   :  { %875 = vmatprep.subr.bf16.mxu0 %v958_v2  ;;  %938 = vmatprep.subr.bf16.mxu1 %v958_v2  ;;  %v963_v7 = vld [vmem:[%s1672_s1 + $0x20] sm:$0xff]   ;;  %v965_v9 = vld [vmem:[%s1672_s1 + $0x18] sm:$0xff]   ;;  %v967_v13 = vld [vmem:[%s1672_s1 + $0x10] sm:$0xff]  }
   0x5   :  { %v974_v11 = vld [vmem:[%s1671_s0 + $0x4] ss:$8 sps:$4 sm:$0xff]  }
   0x6   :  { %v977_v12 = vld [vmem:[%s1671_s0 + $0x44] ss:$8 sps:$4 sm:$0xff]   ;;  %282 = vmatprep.mubr.bf16.mxu0 %v974_v11 }
   0x7   :  { %876 = vmatpush3.bf16.msra.mxu0 %v959_v3  ;;  %946 = vmatpush3.bf16.msra.mxu1 %v959_v3  ;;  %v968_v14 = vld [vmem:[%s1672_s1 + $0x48] sm:$0xff]   ;;  %v970_v16 = vld [vmem:[%s1672_s1 + $0x40] sm:$0xff]  }
   0x8   :  { %877 = vmatprep.subr.bf16.mxu0 %v960_v4  ;;  %939 = vmatprep.subr.bf16.mxu1 %v960_v4  ;;  %v969_v15 = vld [vmem:[%s1672_s1 + $0x8] sm:$0xff]  }
   0x9   :  { %314 = vmatprep.mubr.bf16.mxu1 %v977_v12 }
   0xb   :  { %878 = vmatpush3.bf16.msra.mxu0 %v961_v5  ;;  %947 = vmatpush3.bf16.msra.mxu1 %v961_v5 }
   0xc   :  { %879 = vmatprep.subr.bf16.mxu0 %v962_v6  ;;  %940 = vmatprep.subr.bf16.mxu1 %v962_v6 }
   0xf   :  { %880 = vmatpush3.bf16.msra.mxu0 %v963_v7  ;;  %948 = vmatpush3.bf16.msra.mxu1 %v963_v7 }
  0x10   :  { %881 = vmatprep.subr.bf16.mxu0 %v964_v8  ;;  %941 = vmatprep.subr.bf16.mxu1 %v964_v8 }
  0x13   :  { %882 = vmatpush3.bf16.msra.mxu0 %v965_v9  ;;  %949 = vmatpush3.bf16.msra.mxu1 %v965_v9 }
  0x14   :  { %883 = vmatprep.subr.bf16.mxu0 %v966_v10  ;;  %942 = vmatprep.subr.bf16.mxu1 %v966_v10 }
  0x17   :  { %884 = vmatpush3.bf16.msra.mxu0 %v967_v13  ;;  %950 = vmatpush3.bf16.msra.mxu1 %v967_v13 }
  0x18   :  { %885 = vmatprep.subr.bf16.mxu0 %v968_v14  ;;  %943 = vmatprep.subr.bf16.mxu1 %v968_v14 }
  0x19   :  { %11 = vsyncpa [#allocation3], 0  ;;  %v971_v17 = vld [vmem:[%s1672_s1] sm:$0xff]   ;;  %v978_v20 = vld [vmem:[%s1671_s0 + $0x14] ss:$8 sps:$4 sm:$0xff]  }
  0x1a   :  { %v972_v18 = vld [vmem:[%s1671_s0] ss:$8 sps:$4 sm:$0xff]   ;;  %v981_v21 = vld [vmem:[%s1671_s0 + $0x54] ss:$8 sps:$4 sm:$0xff]   ;;  %v980_v22 = vld [vmem:[%s1671_s0 + $0x10] ss:$8 sps:$4 sm:$0xff]  }
  0x1b   :  { %886 = vmatpush3.bf16.msra.mxu0 %v969_v15  ;;  %951 = vmatpush3.bf16.msra.mxu1 %v969_v15  ;;  %v975_v19 = vld [vmem:[%s1671_s0 + $0x40] ss:$8 sps:$4 sm:$0xff]   ;;  %v983_v23 = vld [vmem:[%s1671_s0 + $0x50] ss:$8 sps:$4 sm:$0xff]   ;;  %v984_v24 = vld [vmem:[%s1671_s0 + $0x24] ss:$8 sps:$4 sm:$0xff]  }
  0x1c   :  { %887 = vmatprep.subr.bf16.mxu0 %v970_v16  ;;  %944 = vmatprep.subr.bf16.mxu1 %v970_v16  ;;  %v987_v25 = vld [vmem:[%s1671_s0 + $0x64] ss:$8 sps:$4 sm:$0xff]   ;;  %v986_v26 = vld [vmem:[%s1671_s0 + $0x20] ss:$8 sps:$4 sm:$0xff]   ;;  %v990_v28 = vld [vmem:[%s1671_s0 + $0x34] ss:$8 sps:$4 sm:$0xff]  }
  0x1d   :  { %v989_v27 = vld [vmem:[%s1671_s0 + $0x60] ss:$8 sps:$4 sm:$0xff]   ;;  %v993_v29 = vld [vmem:[%s1671_s0 + $0x74] ss:$8 sps:$4 sm:$0xff]   ;;  %v992_v30 = vld [vmem:[%s1671_s0 + $0x30] ss:$8 sps:$4 sm:$0xff]  }
  0x1e   :  { %v995_v31 = vld [vmem:[%s1671_s0 + $0x70] ss:$8 sps:$4 sm:$0xff]   ;;  %v1214_v36 = vld [vmem:[%s1673_s2] ss:$0 sm:$0xff] }
  0x1f   :  { %888 = vmatpush3.bf16.msra.mxu0 %v971_v17  ;;  %952 = vmatpush3.bf16.msra.mxu1 %v971_v17 }
  0x22   :  { %283 = vmatmul.mubr.bf16.vlgmr.msra.gmra.mxu0 %v972_v18  ;;  %315 = vmatmul.mubr.bf16.vlgmr.msra.gmra.mxu1 %v975_v19 }
  0x23   :  { %290 = vmatprep.mubr.bf16.mxu0 %v978_v20  ;;  %322 = vmatprep.mubr.bf16.mxu1 %v981_v21 }
  0x2a   :  { %291 = vmatmul.mubr.bf16.gmra.mxu0 %v980_v22  ;;  %323 = vmatmul.mubr.bf16.gmra.mxu1 %v983_v23 }
  0x2b   :  { %298 = vmatprep.mubr.bf16.mxu0 %v984_v24  ;;  %330 = vmatprep.mubr.bf16.mxu1 %v987_v25 }
  0x32   :  { %299 = vmatmul.mubr.bf16.gmra.mxu0 %v986_v26  ;;  %331 = vmatmul.mubr.bf16.gmra.mxu1 %v989_v27 }
  0x33   :  { %306 = vmatprep.mubr.bf16.mxu0 %v990_v28  ;;  %338 = vmatprep.mubr.bf16.mxu1 %v993_v29 }
  0x3a   :  { %307 = vmatmul.mubr.bf16.gmra.mxu0 %v992_v30  ;;  %339 = vmatmul.mubr.bf16.gmra.mxu1 %v995_v31 }
  0xe2   :  { %v889_v32 = vpop.f32.mrf.mxu0  ;;  %v913_v33 = vpop.f32.mrf.mxu1 }
  0xe4   :  { %v890_v34 = vpop.f32.mrf.mxu0  ;;  %v914_v35 = vpop.f32.mrf.mxu1 }
  0xe5   :  { %v891_v37 = vadd.f32 %v890_v34, %v889_v32  ;;  %v915_v40 = vadd.f32 %v914_v35, %v913_v33 }
  0xe6   :  { %v892_v38 = vpop.f32.mrf.mxu0  ;;  %v916_v39 = vpop.f32.mrf.mxu1 }
  0xe7   :  { %v1217_v41 = vadd.f32 %v891_v37, %v1214_v36  ;;  %v1224_v49 = vadd.f32 %v915_v40, %v1214_v36 }
  0xe8   :  { %v893_v42 = vpop.f32.mrf.mxu0  ;;  %v917_v43 = vpop.f32.mrf.mxu1 }
  0xe9   :  { %v918_v44 = vadd.f32 %v917_v43, %v916_v39  ;;  %349 = vadd.xlane.f32.xlu0 %v1217_v41  ;;  %v894_v47 = vadd.f32 %v893_v42, %v892_v38 }
  0xea   :  { %v895_v45 = vpop.f32.mrf.mxu0  ;;  %v919_v46 = vpop.f32.mrf.mxu1 }
  0xeb   :  { %v1221_v48 = vadd.f32 %v918_v44, %v1214_v36  ;;  %v1232_v57 = vadd.f32 %v894_v47, %v1214_v36 }
  0xec   :  { %v896_v50 = vpop.f32.mrf.mxu0  ;;  %v920_v51 = vpop.f32.mrf.mxu1 }
  0xed   :  { %v897_v52 = vadd.f32 %v896_v50, %v895_v45  ;;  %367 = vadd.xlane.f32.xlu1 %v1221_v48  ;;  %365 = vadd.xlane.f32.xlu0 %v1224_v49  ;;  %v921_v53 = vadd.f32 %v920_v51, %v919_v46 }
  0xee   :  { %v898_v54 = vpop.f32.mrf.mxu0  ;;  %v922_v55 = vpop.f32.mrf.mxu1 }
  0xef   :  { %v1229_v56 = vadd.f32 %v897_v52, %v1214_v36  ;;  %v1237_v61 = vadd.f32 %v921_v53, %v1214_v36 }
  0xf0   :  { %v899_v58 = vpop.f32.mrf.mxu0  ;;  %v923_v59 = vpop.f32.mrf.mxu1 }
  0xf1   :  { %v900_v60 = vadd.f32 %v899_v58, %v898_v54  ;;  %353 = vadd.xlane.f32.xlu1 %v1229_v56  ;;  %351 = vadd.xlane.f32.xlu0 %v1232_v57  ;;  %v924_v0 = vadd.f32 %v923_v59, %v922_v55 }
  0xf2   :  { %v901_v62 = vpop.f32.mrf.mxu0  ;;  %v925_v63 = vpop.f32.mrf.mxu1 }
  0xf3   :  { %v1240_v1 = vadd.f32 %v900_v60, %v1214_v36  ;;  %v1245_v8 = vadd.f32 %v924_v0, %v1214_v36 }
  0xf4   :  { %v902_v2 = vpop.f32.mrf.mxu0  ;;  %v926_v3 = vpop.f32.mrf.mxu1 }
  0xf5   :  { %v903_v4 = vadd.f32 %v902_v2, %v901_v62  ;;  %355 = vadd.xlane.f32.xlu1 %v1240_v1  ;;  %369 = vadd.xlane.f32.xlu0 %v1237_v61  ;;  %v927_v5 = vadd.f32 %v926_v3, %v925_v63 }
  0xf6   :  { %v904_v6 = vpop.f32.mrf.mxu0  ;;  %v928_v7 = vpop.f32.mrf.mxu1 }
  0xf7   :  { %v1248_v9 = vadd.f32 %v903_v4, %v1214_v36  ;;  %v1253_v13 = vadd.f32 %v927_v5, %v1214_v36 }
  0xf8   :  { %v905_v10 = vpop.f32.mrf.mxu0  ;;  %v929_v11 = vpop.f32.mrf.mxu1 }
  0xf9   :  { %v906_v12 = vadd.f32 %v905_v10, %v904_v6  ;;  %371 = vadd.xlane.f32.xlu1 %v1245_v8  ;;  %357 = vadd.xlane.f32.xlu0 %v1248_v9  ;;  %v930_v16 = vadd.f32 %v929_v11, %v928_v7 }
  0xfa   :  { %v907_v14 = vpop.f32.mrf.mxu0  ;;  %v931_v15 = vpop.f32.mrf.mxu1 }
  0xfb   :  { %v1256_v17 = vadd.f32 %v906_v12, %v1214_v36  ;;  %v1261_v24 = vadd.f32 %v930_v16, %v1214_v36 }
  0xfc   :  { %v908_v18 = vpop.f32.mrf.mxu0  ;;  %v932_v19 = vpop.f32.mrf.mxu1 }
  0xfd   :  { %v909_v20 = vadd.f32 %v908_v18, %v907_v14  ;;  %359 = vadd.xlane.f32.xlu1 %v1256_v17  ;;  %373 = vadd.xlane.f32.xlu0 %v1253_v13  ;;  %v933_v21 = vadd.f32 %v932_v19, %v931_v15 }
  0xfe   :  { %v910_v22 = vpop.f32.mrf.mxu0  ;;  %v934_v23 = vpop.f32.mrf.mxu1 }
  0xff   :  { %v1264_v25 = vadd.f32 %v909_v20, %v1214_v36  ;;  %v1269_v29 = vadd.f32 %v933_v21, %v1214_v36 }
 0x100   :  { %v911_v26 = vpop.f32.mrf.mxu0  ;;  %v935_v27 = vpop.f32.mrf.mxu1 }
 0x101   :  { %v912_v28 = vadd.f32 %v911_v26, %v910_v22  ;;  %375 = vadd.xlane.f32.xlu1 %v1261_v24  ;;  %361 = vadd.xlane.f32.xlu0 %v1264_v25  ;;  %v936_v30 = vadd.f32 %v935_v27, %v934_v23 }
 0x103   :  { %v1272_v31 = vadd.f32 %v912_v28, %v1214_v36  ;;  %v1277_v32 = vadd.f32 %v936_v30, %v1214_v36 }
 0x105   :  { %363 = vadd.xlane.f32.xlu1 %v1272_v31  ;;  %377 = vadd.xlane.f32.xlu0 %v1269_v29 }
 0x109   :  { %379 = vadd.xlane.f32.xlu1 %v1277_v32 }
 0x172   :  { %v350_v33 = vpop.xlane.xlu0 %349 }
 0x173   :  { %v382_v34 = vmul.f32 0.0078125, %v350_v33 }
 0x175   :  { %v1281_v35 = vsub.f32 %v1217_v41, %v382_v34 }
 0x176   :  { %v368_v37 = vpop.xlane.xlu1 %367  ;;  %v366_v38 = vpop.xlane.xlu0 %365 }
 0x177   :  { %v390_v39 = vmul.f32 0.0078125, %v366_v38  ;;  %v414_v40 = vmul.f32 %v1281_v35, %v1281_v35  ;;  %v391_v43 = vmul.f32 0.0078125, %v368_v37 }
 0x179   :  { %v1286_v42 = vsub.f32 %v1224_v49, %v390_v39  ;;  %430 = vadd.xlane.f32.xlu0 %v414_v40  ;;  %v1297_v51 = vsub.f32 %v1221_v48, %v391_v43 }
 0x17a   :  { %v354_v36 = vpop.xlane.xlu1 %353  ;;  %v352_v44 = vpop.xlane.xlu0 %351 }
 0x17b   :  { %v384_v45 = vmul.f32 0.0078125, %v354_v36  ;;  %v383_v46 = vmul.f32 0.0078125, %v352_v44  ;;  %v422_v47 = vmul.f32 %v1286_v42, %v1286_v42  ;;  %v423_v63 = vmul.f32 %v1297_v51, %v1297_v51 }
 0x17d   :  { %v1291_v41 = vsub.f32 %v1229_v56, %v384_v45  ;;  %v1294_v50 = vsub.f32 %v1232_v57, %v383_v46  ;;  %446 = vadd.xlane.f32.xlu0 %v422_v47 }
 0x17e   :  { %v356_v49 = vpop.xlane.xlu1 %355  ;;  %v370_v52 = vpop.xlane.xlu0 %369 }
 0x17f   :  { %v385_v53 = vmul.f32 0.0078125, %v356_v49  ;;  %v392_v54 = vmul.f32 0.0078125, %v370_v52  ;;  %v416_v55 = vmul.f32 %v1291_v41, %v1291_v41  ;;  %v415_v58 = vmul.f32 %v1294_v50, %v1294_v50 }
 0x181   :  { %v1304_v56 = vsub.f32 %v1237_v61, %v392_v54  ;;  %434 = vadd.xlane.f32.xlu0 %v416_v55  ;;  %432 = vadd.xlane.f32.xlu1 %v415_v58  ;;  %v1307_v57 = vsub.f32 %v1240_v1, %v385_v53 }
 0x182   :  { %v372_v48 = vpop.xlane.xlu1 %371  ;;  %v358_v59 = vpop.xlane.xlu0 %357 }
 0x183   :  { %v393_v60 = vmul.f32 0.0078125, %v372_v48  ;;  %v386_v62 = vmul.f32 0.0078125, %v358_v59  ;;  %v424_v0 = vmul.f32 %v1304_v56, %v1304_v56  ;;  %v417_v1 = vmul.f32 %v1307_v57, %v1307_v57 }
 0x185   :  { %v1314_v2 = vsub.f32 %v1248_v9, %v386_v62  ;;  %448 = vadd.xlane.f32.xlu1 %v423_v63  ;;  %450 = vadd.xlane.f32.xlu0 %v424_v0  ;;  %v1319_v4 = vsub.f32 %v1245_v8, %v393_v60  ;;  %v1363_v0 = vld [vmem:[%s1673_s2 + $0x1] ss:$0 sm:$0xff] }
 0x186   :  { %v360_v61 = vpop.xlane.xlu1 %359  ;;  %v374_v3 = vpop.xlane.xlu0 %373 }
 0x187   :  { %v387_v5 = vmul.f32 0.0078125, %v360_v61  ;;  %v394_v6 = vmul.f32 0.0078125, %v374_v3  ;;  %v418_v7 = vmul.f32 %v1314_v2, %v1314_v2  ;;  %v425_v8 = vmul.f32 %v1319_v4, %v1319_v4 }
 0x189   :  { %v1324_v10 = vsub.f32 %v1253_v13, %v394_v6  ;;  %436 = vadd.xlane.f32.xlu1 %v417_v1  ;;  %438 = vadd.xlane.f32.xlu0 %v418_v7  ;;  %v1327_v9 = vsub.f32 %v1256_v17, %v387_v5  ;;  %v1369_v7 = vld [vmem:[%s1673_s2 + $0x2] ss:$0 sm:$0xff] }
 0x18a   :  { %v376_v11 = vpop.xlane.xlu1 %375  ;;  %v362_v12 = vpop.xlane.xlu0 %361 }
 0x18b   :  { %v395_v14 = vmul.f32 0.0078125, %v376_v11  ;;  %v388_v15 = vmul.f32 0.0078125, %v362_v12  ;;  %v426_v16 = vmul.f32 %v1324_v10, %v1324_v10  ;;  %v419_v17 = vmul.f32 %v1327_v9, %v1327_v9 }
 0x18d   :  { %v1334_v18 = vsub.f32 %v1264_v25, %v388_v15  ;;  %452 = vadd.xlane.f32.xlu1 %v425_v8  ;;  %454 = vadd.xlane.f32.xlu0 %v426_v16  ;;  %v1339_v20 = vsub.f32 %v1261_v24, %v395_v14 }
 0x18e   :  { %v364_v13 = vpop.xlane.xlu1 %363  ;;  %v378_v19 = vpop.xlane.xlu0 %377 }
 0x18f   :  { %v389_v21 = vmul.f32 0.0078125, %v364_v13  ;;  %v396_v22 = vmul.f32 0.0078125, %v378_v19  ;;  %v420_v23 = vmul.f32 %v1334_v18, %v1334_v18  ;;  %v427_v30 = vmul.f32 %v1339_v20, %v1339_v20 }
 0x191   :  { %v1344_v26 = vsub.f32 %v1269_v29, %v396_v22  ;;  %440 = vadd.xlane.f32.xlu1 %v419_v17  ;;  %442 = vadd.xlane.f32.xlu0 %v420_v23  ;;  %v1347_v27 = vsub.f32 %v1272_v31, %v389_v21 }
 0x192   :  { %v380_v25 = vpop.xlane.xlu1 %379 }
 0x193   :  { %v397_v28 = vmul.f32 0.0078125, %v380_v25  ;;  %v428_v24 = vmul.f32 %v1344_v26, %v1344_v26  ;;  %v421_v29 = vmul.f32 %v1347_v27, %v1347_v27 }
 0x195   :  { %456 = vadd.xlane.f32.xlu1 %v427_v30  ;;  %458 = vadd.xlane.f32.xlu0 %v428_v24  ;;  %v1354_v33 = vsub.f32 %v1277_v32, %v397_v28 }
 0x197   :  { %v429_v31 = vmul.f32 %v1354_v33, %v1354_v33 }
 0x199   :  { %444 = vadd.xlane.f32.xlu1 %v421_v29 }
 0x19d   :  { %460 = vadd.xlane.f32.xlu1 %v429_v31 }
 0x202   :  { %v431_v34 = vpop.xlane.xlu0 %430 }
 0x203   :  { %v462_v37 = vmul.f32 0.0078125, %v431_v34 }
 0x205   :  { %v478_v38 = vadd.f32 1e-05, %v462_v37 }
 0x206   :  { %v447_v39 = vpop.xlane.xlu0 %446 }
 0x207   :  { %996 = vrsqrt.f32 %v478_v38  ;;  %v470_v40 = vmul.f32 0.0078125, %v447_v39 }
 0x209   :  { %v486_v43 = vadd.f32 1e-05, %v470_v40 }
 0x20a   :  { %v433_v36 = vpop.xlane.xlu1 %432  ;;  %v435_v44 = vpop.xlane.xlu0 %434 }
 0x20b   :  { %998 = vrsqrt.f32 %v486_v43  ;;  %v463_v32 = vmul.f32 0.0078125, %v433_v36  ;;  %v464_v45 = vmul.f32 0.0078125, %v435_v44 }
 0x20d   :  { %v479_v46 = vadd.f32 1e-05, %v463_v32  ;;  %v480_v47 = vadd.f32 1e-05, %v464_v45 }
 0x20e   :  { %v449_v49 = vpop.xlane.xlu1 %448  ;;  %v451_v52 = vpop.xlane.xlu0 %450 }
 0x20f   :  { %1000 = vrsqrt.f32 %v479_v46  ;;  %v471_v53 = vmul.f32 0.0078125, %v449_v49  ;;  %v472_v54 = vmul.f32 0.0078125, %v451_v52 }
 0x210   :  { %1002 = vrsqrt.f32 %v480_v47 }
 0x211   :  { %v487_v55 = vadd.f32 1e-05, %v471_v53  ;;  %v488_v58 = vadd.f32 1e-05, %v472_v54 }
 0x212   :  { %v437_v48 = vpop.xlane.xlu1 %436  ;;  %v439_v59 = vpop.xlane.xlu0 %438 }
 0x213   :  { %1004 = vrsqrt.f32 %v487_v55  ;;  %v465_v60 = vmul.f32 0.0078125, %v437_v48  ;;  %v466_v62 = vmul.f32 0.0078125, %v439_v59 }
 0x214   :  { %v997_v63 = vpop.eup %996  ;;  %1006 = vrsqrt.f32 %v488_v58 }
 0x215   :  { %v481_v61 = vadd.f32 1e-05, %v465_v60  ;;  %v482_v3 = vadd.f32 1e-05, %v466_v62  ;;  %v510_v1 = vmul.f32 %v997_v63, %v1281_v35 }
 0x216   :  { %v453_v5 = vpop.xlane.xlu1 %452  ;;  %v455_v6 = vpop.xlane.xlu0 %454 }
 0x217   :  { %1008 = vrsqrt.f32 %v481_v61  ;;  %v473_v11 = vmul.f32 0.0078125, %v453_v5  ;;  %v474_v12 = vmul.f32 0.0078125, %v455_v6  ;;  %v530_v14 = vmul.f32 %v1363_v0, %v510_v1 }
 0x218   :  { %v999_v15 = vpop.eup %998  ;;  %1010 = vrsqrt.f32 %v482_v3 }
 0x219   :  { %v489_v8 = vadd.f32 1e-05, %v473_v11  ;;  %v490_v16 = vadd.f32 1e-05, %v474_v12  ;;  %v1373_v13 = vadd.f32 %v1369_v7, %v530_v14  ;;  %v518_v35 = vmul.f32 %v999_v15, %v1286_v42 }
 0x21a   :  { %v441_v19 = vpop.xlane.xlu1 %440  ;;  %v443_v17 = vpop.xlane.xlu0 %442 }
 0x21b   :  { %1012 = vrsqrt.f32 %v489_v8  ;;  %v467_v21 = vmul.f32 0.0078125, %v441_v19  ;;  %v468_v22 = vmul.f32 0.0078125, %v443_v17  ;;  %584 = vadd.xlane.f32.xlu0 %v1373_v13  ;;  %566 = vst [vmem:[%s1675_s4] sm:$0xff] %v1373_v13  ;;  %v538_v23 = vmul.f32 %v1363_v0, %v518_v35 }
 0x21c   :  { %v1001_v25 = vpop.eup %1000  ;;  %1014 = vrsqrt.f32 %v490_v16 }
 0x21d   :  { %v1003_v28 = vpop.eup %1002  ;;  %v483_v30 = vadd.f32 1e-05, %v467_v21  ;;  %v484_v24 = vadd.f32 1e-05, %v468_v22  ;;  %v1383_v42 = vadd.f32 %v1369_v7, %v538_v23  ;;  %v511_v29 = vmul.f32 %v1001_v25, %v1294_v50 }
 0x21e   :  { %v457_v31 = vpop.xlane.xlu1 %456  ;;  %v459_v34 = vpop.xlane.xlu0 %458  ;;  %v512_v37 = vmul.f32 %v1003_v28, %v1291_v41 }
 0x21f   :  { %1016 = vrsqrt.f32 %v483_v30  ;;  %v475_v38 = vmul.f32 0.0078125, %v457_v31  ;;  %v476_v39 = vmul.f32 0.0078125, %v459_v34  ;;  %600 = vadd.xlane.f32.xlu0 %v1383_v42  ;;  %574 = vst [vmem:[%s1675_s4 + $0x40] sm:$0xff] %v1383_v42  ;;  %v531_v40 = vmul.f32 %v1363_v0, %v511_v29 }
 0x220   :  { %v1005_v43 = vpop.eup %1004  ;;  %1018 = vrsqrt.f32 %v484_v24  ;;  %v532_v50 = vmul.f32 %v1363_v0, %v512_v37 }
 0x221   :  { %v1007_v36 = vpop.eup %1006  ;;  %v491_v44 = vadd.f32 1e-05, %v475_v38  ;;  %v492_v32 = vadd.f32 1e-05, %v476_v39  ;;  %v1395_v41 = vadd.f32 %v1369_v7, %v531_v40  ;;  %v519_v45 = vmul.f32 %v1005_v43, %v1297_v51 }
 0x222   :  { %v445_v46 = vpop.xlane.xlu1 %444  ;;  %v1399_v47 = vadd.f32 %v1369_v7, %v532_v50  ;;  %v520_v49 = vmul.f32 %v1007_v36, %v1304_v56 }
 0x223   :  { %1020 = vrsqrt.f32 %v491_v44  ;;  %v469_v52 = vmul.f32 0.0078125, %v445_v46  ;;  %586 = vadd.xlane.f32.xlu1 %v1395_v41  ;;  %567 = vst [vmem:[%s1675_s4 + $0x8] sm:$0xff] %v1395_v41  ;;  %v539_v53 = vmul.f32 %v1363_v0, %v519_v45 }
 0x224   :  { %v1009_v54 = vpop.eup %1008  ;;  %1022 = vrsqrt.f32 %v492_v32  ;;  %588 = vadd.xlane.f32.xlu0 %v1399_v47  ;;  %568 = vst [vmem:[%s1675_s4 + $0x10] sm:$0xff] %v1399_v47  ;;  %v540_v51 = vmul.f32 %v1363_v0, %v520_v49 }
 0x225   :  { %v1011_v56 = vpop.eup %1010  ;;  %v485_v55 = vadd.f32 1e-05, %v469_v52  ;;  %v1415_v58 = vadd.f32 %v1369_v7, %v539_v53  ;;  %v513_v48 = vmul.f32 %v1009_v54, %v1307_v57 }
 0x226   :  { %v461_v59 = vpop.xlane.xlu1 %460  ;;  %v1419_v60 = vadd.f32 %v1369_v7, %v540_v51  ;;  %v514_v62 = vmul.f32 %v1011_v56, %v1314_v2 }
 0x227   :  { %1024 = vrsqrt.f32 %v485_v55  ;;  %v477_v63 = vmul.f32 0.0078125, %v461_v59  ;;  %602 = vadd.xlane.f32.xlu1 %v1415_v58  ;;  %575 = vst [vmem:[%s1675_s4 + $0x48] sm:$0xff] %v1415_v58  ;;  %v533_v61 = vmul.f32 %v1363_v0, %v513_v48 }
 0x228   :  { %v1013_v3 = vpop.eup %1012  ;;  %604 = vadd.xlane.f32.xlu0 %v1419_v60  ;;  %576 = vst [vmem:[%s1675_s4 + $0x50] sm:$0xff] %v1419_v60  ;;  %v534_v57 = vmul.f32 %v1363_v0, %v514_v62 }
 0x229   :  { %v1015_v2 = vpop.eup %1014  ;;  %v493_v1 = vadd.f32 1e-05, %v477_v63  ;;  %v1435_v5 = vadd.f32 %v1369_v7, %v533_v61  ;;  %v521_v6 = vmul.f32 %v1013_v3, %v1319_v4 }
 0x22a   :  { %v1439_v11 = vadd.f32 %v1369_v7, %v534_v57  ;;  %v522_v12 = vmul.f32 %v1015_v2, %v1324_v10 }
 0x22b   :  { %1026 = vrsqrt.f32 %v493_v1  ;;  %590 = vadd.xlane.f32.xlu1 %v1435_v5  ;;  %569 = vst [vmem:[%s1675_s4 + $0x18] sm:$0xff] %v1435_v5  ;;  %v541_v14 = vmul.f32 %v1363_v0, %v521_v6 }
 0x22c   :  { %v1017_v15 = vpop.eup %1016  ;;  %592 = vadd.xlane.f32.xlu0 %v1439_v11  ;;  %570 = vst [vmem:[%s1675_s4 + $0x20] sm:$0xff] %v1439_v11  ;;  %v542_v4 = vmul.f32 %v1363_v0, %v522_v12 }
 0x22d   :  { %v1019_v10 = vpop.eup %1018  ;;  %v1455_v8 = vadd.f32 %v1369_v7, %v541_v14  ;;  %v515_v16 = vmul.f32 %v1017_v15, %v1327_v9 }
 0x22e   :  { %v1459_v35 = vadd.f32 %v1369_v7, %v542_v4  ;;  %v516_v19 = vmul.f32 %v1019_v10, %v1334_v18 }
 0x22f   :  { %606 = vadd.xlane.f32.xlu1 %v1455_v8  ;;  %577 = vst [vmem:[%s1675_s4 + $0x58] sm:$0xff] %v1455_v8  ;;  %v535_v17 = vmul.f32 %v1363_v0, %v515_v16 }
 0x230   :  { %v1021_v21 = vpop.eup %1020  ;;  %608 = vadd.xlane.f32.xlu0 %v1459_v35  ;;  %578 = vst [vmem:[%s1675_s4 + $0x60] sm:$0xff] %v1459_v35  ;;  %v536_v9 = vmul.f32 %v1363_v0, %v516_v19 }
 0x231   :  { %v1023_v18 = vpop.eup %1022  ;;  %v1475_v22 = vadd.f32 %v1369_v7, %v535_v17  ;;  %v523_v23 = vmul.f32 %v1021_v21, %v1339_v20 }
 0x232   :  { %v1479_v25 = vadd.f32 %v1369_v7, %v536_v9  ;;  %v524_v28 = vmul.f32 %v1023_v18, %v1344_v26 }
 0x233   :  { %594 = vadd.xlane.f32.xlu1 %v1475_v22  ;;  %571 = vst [vmem:[%s1675_s4 + $0x28] sm:$0xff] %v1475_v22  ;;  %v543_v30 = vmul.f32 %v1363_v0, %v523_v23 }
 0x234   :  { %v1025_v24 = vpop.eup %1024  ;;  %596 = vadd.xlane.f32.xlu0 %v1479_v25  ;;  %572 = vst [vmem:[%s1675_s4 + $0x30] sm:$0xff] %v1479_v25  ;;  %v544_v20 = vmul.f32 %v1363_v0, %v524_v28 }
 0x235   :  { %v1495_v26 = vadd.f32 %v1369_v7, %v543_v30  ;;  %v517_v29 = vmul.f32 %v1025_v24, %v1347_v27 }
 0x236   :  { %v1499_v31 = vadd.f32 %v1369_v7, %v544_v20 }
 0x237   :  { %610 = vadd.xlane.f32.xlu1 %v1495_v26  ;;  %579 = vst [vmem:[%s1675_s4 + $0x68] sm:$0xff] %v1495_v26  ;;  %v537_v34 = vmul.f32 %v1363_v0, %v517_v29 }
 0x238   :  { %v1027_v37 = vpop.eup %1026  ;;  %612 = vadd.xlane.f32.xlu0 %v1499_v31  ;;  %580 = vst [vmem:[%s1675_s4 + $0x70] sm:$0xff] %v1499_v31 }
 0x239   :  { %v1513_v27 = vadd.f32 %v1369_v7, %v537_v34  ;;  %v525_v38 = vmul.f32 %v1027_v37, %v1354_v33 }
 0x23b   :  { %598 = vadd.xlane.f32.xlu1 %v1513_v27  ;;  %573 = vst [vmem:[%s1675_s4 + $0x38] sm:$0xff] %v1513_v27  ;;  %v545_v39 = vmul.f32 %v1363_v0, %v525_v38 }
 0x23d   :  { %v1523_v40 = vadd.f32 %v1369_v7, %v545_v39 }
 0x23f   :  { %614 = vadd.xlane.f32.xlu1 %v1523_v40  ;;  %581 = vst [vmem:[%s1675_s4 + $0x78] sm:$0xff] %v1523_v40 }
 0x2a4   :  { %v585_v33 = vpop.xlane.xlu0 %584 }
 0x2a5   :  { %v616_v43 = vmul.f32 0.0078125, %v585_v33 }
 0x2a7   :  { %v1531_v50 = vsub.f32 %v1373_v13, %v616_v43 }
 0x2a8   :  { %v601_v36 = vpop.xlane.xlu0 %600 }
 0x2a9   :  { %v624_v44 = vmul.f32 0.0078125, %v601_v36  ;;  %v648_v0 = vmul.f32 %v1531_v50, %v1531_v50 }
 0x2ab   :  { %v1536_v7 = vsub.f32 %v1383_v42, %v624_v44  ;;  %664 = vadd.xlane.f32.xlu0 %v648_v0 }
 0x2ac   :  { %v587_v32 = vpop.xlane.xlu1 %586 }
 0x2ad   :  { %v617_v45 = vmul.f32 0.0078125, %v587_v32  ;;  %v589_v46 = vpop.xlane.xlu0 %588  ;;  %v656_v49 = vmul.f32 %v1536_v7, %v1536_v7 }
 0x2ae   :  { %v618_v52 = vmul.f32 0.0078125, %v589_v46 }
 0x2af   :  { %v1541_v53 = vsub.f32 %v1395_v41, %v617_v45  ;;  %680 = vadd.xlane.f32.xlu0 %v656_v49 }
 0x2b0   :  { %v1544_v13 = vsub.f32 %v1399_v47, %v618_v52  ;;  %v603_v54 = vpop.xlane.xlu1 %602 }
 0x2b1   :  { %v625_v51 = vmul.f32 0.0078125, %v603_v54  ;;  %v605_v56 = vpop.xlane.xlu0 %604  ;;  %v649_v42 = vmul.f32 %v1541_v53, %v1541_v53 }
 0x2b2   :  { %v626_v55 = vmul.f32 0.0078125, %v605_v56  ;;  %v650_v48 = vmul.f32 %v1544_v13, %v1544_v13 }
 0x2b3   :  { %v1551_v59 = vsub.f32 %v1415_v58, %v625_v51  ;;  %666 = vadd.xlane.f32.xlu1 %v649_v42 }
 0x2b4   :  { %v1554_v41 = vsub.f32 %v1419_v60, %v626_v55  ;;  %668 = vadd.xlane.f32.xlu0 %v650_v48  ;;  %v591_v47 = vpop.xlane.xlu1 %590 }
 0x2b5   :  { %v619_v62 = vmul.f32 0.0078125, %v591_v47  ;;  %v593_v63 = vpop.xlane.xlu0 %592  ;;  %v657_v61 = vmul.f32 %v1551_v59, %v1551_v59 }
 0x2b6   :  { %v620_v3 = vmul.f32 0.0078125, %v593_v63  ;;  %v658_v57 = vmul.f32 %v1554_v41, %v1554_v41 }
 0x2b7   :  { %v1561_v2 = vsub.f32 %v1435_v5, %v619_v62  ;;  %682 = vadd.xlane.f32.xlu1 %v657_v61 }
 0x2b8   :  { %v1564_v58 = vsub.f32 %v1439_v11, %v620_v3  ;;  %684 = vadd.xlane.f32.xlu0 %v658_v57  ;;  %v607_v60 = vpop.xlane.xlu1 %606 }
 0x2b9   :  { %v627_v1 = vmul.f32 0.0078125, %v607_v60  ;;  %v609_v6 = vpop.xlane.xlu0 %608  ;;  %v651_v12 = vmul.f32 %v1561_v2, %v1561_v2  ;;  %v1613_v60 = vld [vmem:[%s1674_s3] ss:$0 sm:$0xff] }
 0x2ba   :  { %v628_v14 = vmul.f32 0.0078125, %v609_v6  ;;  %v652_v15 = vmul.f32 %v1564_v58, %v1564_v58 }
 0x2bb   :  { %v1571_v4 = vsub.f32 %v1455_v8, %v627_v1  ;;  %670 = vadd.xlane.f32.xlu1 %v651_v12 }
 0x2bc   :  { %v1574_v5 = vsub.f32 %v1459_v35, %v628_v14  ;;  %672 = vadd.xlane.f32.xlu0 %v652_v15  ;;  %v595_v11 = vpop.xlane.xlu1 %594  ;;  %v1619_v14 = vld [vmem:[%s1674_s3 + $0x1] ss:$0 sm:$0xff]  ;;  %s1082_s3 = smov [#allocation2]  }
 0x2bd   :  { %v621_v10 = vmul.f32 0.0078125, %v595_v11  ;;  %v597_v16 = vpop.xlane.xlu0 %596  ;;  %v659_v19 = vmul.f32 %v1571_v4, %v1571_v4  ;;  %s823_s16 = sshll.u32 %s1082_s3, 4  ;;  %s824_s16 = int_to_ptr.vmem [resolvable:$true] %s823_s16 }
 0x2be   :  { %v622_v17 = vmul.f32 0.0078125, %v597_v16  ;;  %v660_v21 = vmul.f32 %v1574_v5, %v1574_v5  ;;  %s1060_s17 = scalar_lea.vmem %s824_s16, 2048  ;;  %p1065_p1 = scmp.lt.s32.totalorder %s824_s16, %s824_s16 }
 0x2bf   :  { %v1581_v9 = vsub.f32 %v1475_v22, %v621_v10  ;;  %686 = vadd.xlane.f32.xlu1 %v659_v19  ;;  %p1061_p0 = scmp.ne.s32.totalorder %s824_s16, %s1060_s17  ;;  %p1066_p2 = scmp.lt.s32.totalorder %s1060_s17, %s1060_s17 }
 0x2c0   :  { %v1584_v8 = vsub.f32 %v1479_v25, %v622_v17  ;;  %688 = vadd.xlane.f32.xlu0 %v660_v21  ;;  %v611_v35 = vpop.xlane.xlu1 %610 }
 0x2c1   :  { %v629_v18 = vmul.f32 0.0078125, %v611_v35  ;;  %v613_v23 = vpop.xlane.xlu0 %612  ;;  %v653_v28 = vmul.f32 %v1581_v9, %v1581_v9  ;;  %p1067_p3 = por %p1066_p2, %p1065_p1 }
 0x2c2   :  { %v630_v30 = vmul.f32 0.0078125, %v613_v23  ;;  %v654_v24 = vmul.f32 %v1584_v8, %v1584_v8 }
 0x2c3   :  { %v1591_v20 = vsub.f32 %v1495_v26, %v629_v18  ;;  %674 = vadd.xlane.f32.xlu1 %v653_v28  ;;  %p1068_p4 = pnand %p1067_p3, %p1061_p0 }
 0x2c4   :  { %v1594_v22 = vsub.f32 %v1499_v31, %v630_v30  ;;  %676 = vadd.xlane.f32.xlu0 %v654_v24  ;;  %v599_v25 = vpop.xlane.xlu1 %598 }
 0x2c5   :  { %v623_v29 = vmul.f32 0.0078125, %v599_v25  ;;  %v661_v34 = vmul.f32 %v1591_v20, %v1591_v20 }
 0x2c6   :  { %v662_v37 = vmul.f32 %v1594_v22, %v1594_v22 }
 0x2c7   :  { %v1601_v38 = vsub.f32 %v1513_v27, %v623_v29  ;;  %690 = vadd.xlane.f32.xlu1 %v661_v34 }
 0x2c8   :  { %692 = vadd.xlane.f32.xlu0 %v662_v37  ;;  %v615_v26 = vpop.xlane.xlu1 %614 }
 0x2c9   :  { %v631_v39 = vmul.f32 0.0078125, %v615_v26  ;;  %v655_v31 = vmul.f32 %v1601_v38, %v1601_v38 }
 0x2cb   :  { %v1606_v33 = vsub.f32 %v1523_v40, %v631_v39  ;;  %678 = vadd.xlane.f32.xlu1 %v655_v31 }
 0x2cd   :  { %v663_v43 = vmul.f32 %v1606_v33, %v1606_v33 }
 0x2cf   :  { %694 = vadd.xlane.f32.xlu1 %v663_v43 }
 0x334   :  { %v665_v36 = vpop.xlane.xlu0 %664 }
 0x335   :  { %v696_v44 = vmul.f32 0.0078125, %v665_v36 }
 0x337   :  { %v712_v0 = vadd.f32 1e-05, %v696_v44 }
 0x338   :  { %v681_v27 = vpop.xlane.xlu0 %680 }
 0x339   :  { %1028 = vrsqrt.f32 %v712_v0  ;;  %v704_v32 = vmul.f32 0.0078125, %v681_v27 }
 0x33b   :  { %v720_v45 = vadd.f32 1e-05, %v704_v32 }
 0x33c   :  { %v667_v46 = vpop.xlane.xlu1 %666 }
 0x33d   :  { %1030 = vrsqrt.f32 %v720_v45  ;;  %v697_v49 = vmul.f32 0.0078125, %v667_v46  ;;  %v669_v52 = vpop.xlane.xlu0 %668 }
 0x33e   :  { %v698_v54 = vmul.f32 0.0078125, %v669_v52 }
 0x33f   :  { %v713_v51 = vadd.f32 1e-05, %v697_v49 }
 0x340   :  { %v714_v40 = vadd.f32 1e-05, %v698_v54  ;;  %v683_v56 = vpop.xlane.xlu1 %682 }
 0x341   :  { %1032 = vrsqrt.f32 %v713_v51  ;;  %v705_v42 = vmul.f32 0.0078125, %v683_v56  ;;  %v685_v55 = vpop.xlane.xlu0 %684 }
 0x342   :  { %1034 = vrsqrt.f32 %v714_v40  ;;  %v706_v48 = vmul.f32 0.0078125, %v685_v55 }
 0x343   :  { %v721_v47 = vadd.f32 1e-05, %v705_v42 }
 0x344   :  { %v722_v62 = vadd.f32 1e-05, %v706_v48  ;;  %v671_v63 = vpop.xlane.xlu1 %670 }
 0x345   :  { %1036 = vrsqrt.f32 %v721_v47  ;;  %v699_v61 = vmul.f32 0.0078125, %v671_v63  ;;  %v673_v3 = vpop.xlane.xlu0 %672 }
 0x346   :  { %v1029_v57 = vpop.eup %1028  ;;  %1038 = vrsqrt.f32 %v722_v62  ;;  %v700_v1 = vmul.f32 0.0078125, %v673_v3 }
 0x347   :  { %v744_v6 = vmul.f32 %v1029_v57, %v1531_v50  ;;  %v715_v12 = vadd.f32 1e-05, %v699_v61 }
 0x348   :  { %v716_v15 = vadd.f32 1e-05, %v700_v1  ;;  %v687_v11 = vpop.xlane.xlu1 %686 }
 0x349   :  { %v764_v10 = vmul.f32 %v1613_v60, %v744_v6  ;;  %1040 = vrsqrt.f32 %v715_v12  ;;  %v707_v16 = vmul.f32 0.0078125, %v687_v11  ;;  %v689_v19 = vpop.xlane.xlu0 %688 }
 0x34a   :  { %v1031_v17 = vpop.eup %1030  ;;  %1042 = vrsqrt.f32 %v716_v15  ;;  %v708_v21 = vmul.f32 0.0078125, %v689_v19 }
 0x34b   :  { %v784_v35 = vadd.f32 %v1619_v14, %v764_v10  ;;  %v752_v50 = vmul.f32 %v1031_v17, %v1536_v7  ;;  %v723_v18 = vadd.f32 1e-05, %v707_v16 }
 0x34c   :  { %v724_v23 = vadd.f32 1e-05, %v708_v21  ;;  %v675_v28 = vpop.xlane.xlu1 %674 }
 0x34d   :  { %800 = vst [vmem:[#allocation2] sm:$0xff] %v784_v35  ;;  %v772_v30 = vmul.f32 %v1613_v60, %v752_v50  ;;  %1044 = vrsqrt.f32 %v723_v18  ;;  %v701_v24 = vmul.f32 0.0078125, %v675_v28  ;;  %v677_v25 = vpop.xlane.xlu0 %676 }
 0x34e   :  { %v1033_v29 = vpop.eup %1032  ;;  %1046 = vrsqrt.f32 %v724_v23  ;;  %v702_v34 = vmul.f32 0.0078125, %v677_v25 }
 0x34f   :  { %v1035_v37 = vpop.eup %1034  ;;  %v792_v26 = vadd.f32 %v1619_v14, %v772_v30  ;;  %v745_v39 = vmul.f32 %v1033_v29, %v1541_v53  ;;  %v717_v31 = vadd.f32 1e-05, %v701_v24 }
 0x350   :  { %v746_v7 = vmul.f32 %v1035_v37, %v1544_v13  ;;  %v718_v43 = vadd.f32 1e-05, %v702_v34  ;;  %v691_v36 = vpop.xlane.xlu1 %690 }
 0x351   :  { %808 = vst [vmem:[#allocation2 + $0x40] sm:$0xff] %v792_v26  ;;  %v765_v44 = vmul.f32 %v1613_v60, %v745_v39  ;;  %1048 = vrsqrt.f32 %v717_v31  ;;  %v709_v0 = vmul.f32 0.0078125, %v691_v36  ;;  %v693_v27 = vpop.xlane.xlu0 %692 }
 0x352   :  { %v1037_v32 = vpop.eup %1036  ;;  %v766_v45 = vmul.f32 %v1613_v60, %v746_v7  ;;  %1050 = vrsqrt.f32 %v718_v43  ;;  %v710_v46 = vmul.f32 0.0078125, %v693_v27 }
 0x353   :  { %v1039_v49 = vpop.eup %1038  ;;  %v785_v52 = vadd.f32 %v1619_v14, %v765_v44  ;;  %v753_v53 = vmul.f32 %v1037_v32, %v1551_v59  ;;  %v725_v54 = vadd.f32 1e-05, %v709_v0 }
 0x354   :  { %v786_v13 = vadd.f32 %v1619_v14, %v766_v45  ;;  %v754_v51 = vmul.f32 %v1039_v49, %v1554_v41  ;;  %v726_v40 = vadd.f32 1e-05, %v710_v46  ;;  %v679_v56 = vpop.xlane.xlu1 %678 }
 0x355   :  { %801 = vst [vmem:[#allocation2 + $0x8] sm:$0xff] %v785_v52  ;;  %v773_v42 = vmul.f32 %v1613_v60, %v753_v53  ;;  %1052 = vrsqrt.f32 %v725_v54  ;;  %v703_v55 = vmul.f32 0.0078125, %v679_v56 }
 0x356   :  { %v1041_v48 = vpop.eup %1040  ;;  %802 = vst [vmem:[#allocation2 + $0x10] sm:$0xff] %v786_v13  ;;  %v774_v47 = vmul.f32 %v1613_v60, %v754_v51  ;;  %1054 = vrsqrt.f32 %v726_v40 }
 0x357   :  { %v1043_v62 = vpop.eup %1042  ;;  %v793_v59 = vadd.f32 %v1619_v14, %v773_v42  ;;  %v747_v63 = vmul.f32 %v1041_v48, %v1561_v2  ;;  %v719_v61 = vadd.f32 1e-05, %v703_v55 }
 0x358   :  { %v794_v41 = vadd.f32 %v1619_v14, %v774_v47  ;;  %v748_v3 = vmul.f32 %v1043_v62, %v1564_v58  ;;  %v695_v57 = vpop.xlane.xlu1 %694 }
 0x359   :  { %809 = vst [vmem:[#allocation2 + $0x48] sm:$0xff] %v793_v59  ;;  %v767_v1 = vmul.f32 %v1613_v60, %v747_v63  ;;  %1056 = vrsqrt.f32 %v719_v61  ;;  %v711_v6 = vmul.f32 0.0078125, %v695_v57 }
 0x35a   :  { %v1045_v12 = vpop.eup %1044  ;;  %810 = vst [vmem:[#allocation2 + $0x50] sm:$0xff] %v794_v41  ;;  %v768_v15 = vmul.f32 %v1613_v60, %v748_v3 }
 0x35b   :  { %v1047_v11 = vpop.eup %1046  ;;  %v787_v10 = vadd.f32 %v1619_v14, %v767_v1  ;;  %v755_v2 = vmul.f32 %v1045_v12, %v1571_v4  ;;  %v727_v16 = vadd.f32 1e-05, %v711_v6 }
 0x35c   :  { %v788_v19 = vadd.f32 %v1619_v14, %v768_v15  ;;  %v756_v58 = vmul.f32 %v1047_v11, %v1574_v5 }
 0x35d   :  { %803 = vst [vmem:[#allocation2 + $0x18] sm:$0xff] %v787_v10  ;;  %v775_v17 = vmul.f32 %v1613_v60, %v755_v2  ;;  %1058 = vrsqrt.f32 %v727_v16 }
 0x35e   :  { %v1049_v21 = vpop.eup %1048  ;;  %804 = vst [vmem:[#allocation2 + $0x20] sm:$0xff] %v788_v19  ;;  %v776_v35 = vmul.f32 %v1613_v60, %v756_v58 }
 0x35f   :  { %v1051_v50 = vpop.eup %1050  ;;  %v795_v18 = vadd.f32 %v1619_v14, %v775_v17  ;;  %v749_v23 = vmul.f32 %v1049_v21, %v1581_v9 }
 0x360   :  { %v796_v4 = vadd.f32 %v1619_v14, %v776_v35  ;;  %v750_v28 = vmul.f32 %v1051_v50, %v1584_v8 }
 0x361   :  { %811 = vst [vmem:[#allocation2 + $0x58] sm:$0xff] %v795_v18  ;;  %v769_v5 = vmul.f32 %v1613_v60, %v749_v23 }
 0x362   :  { %v1053_v30 = vpop.eup %1052  ;;  %812 = vst [vmem:[#allocation2 + $0x60] sm:$0xff] %v796_v4  ;;  %v770_v24 = vmul.f32 %v1613_v60, %v750_v28 }
 0x363   :  { %v1055_v25 = vpop.eup %1054  ;;  %v789_v29 = vadd.f32 %v1619_v14, %v769_v5  ;;  %v757_v34 = vmul.f32 %v1053_v30, %v1591_v20 }
 0x364   :  { %v790_v37 = vadd.f32 %v1619_v14, %v770_v24  ;;  %v758_v9 = vmul.f32 %v1055_v25, %v1594_v22 }
 0x365   :  { %805 = vst [vmem:[#allocation2 + $0x28] sm:$0xff] %v789_v29  ;;  %v777_v26 = vmul.f32 %v1613_v60, %v757_v34 }
 0x366   :  { %v1057_v8 = vpop.eup %1056  ;;  %806 = vst [vmem:[#allocation2 + $0x30] sm:$0xff] %v790_v37  ;;  %v778_v39 = vmul.f32 %v1613_v60, %v758_v9 }
 0x367   :  { %v797_v31 = vadd.f32 %v1619_v14, %v777_v26  ;;  %v751_v7 = vmul.f32 %v1057_v8, %v1601_v38 }
 0x368   :  { %v798_v43 = vadd.f32 %v1619_v14, %v778_v39 }
 0x369   :  { %813 = vst [vmem:[#allocation2 + $0x68] sm:$0xff] %v797_v31  ;;  %v771_v20 = vmul.f32 %v1613_v60, %v751_v7 }
 0x36a   :  { %v1059_v36 = vpop.eup %1058  ;;  %814 = vst [vmem:[#allocation2 + $0x70] sm:$0xff] %v798_v43 }
 0x36b   :  { %v791_v22 = vadd.f32 %v1619_v14, %v771_v20  ;;  %v759_v44 = vmul.f32 %v1059_v36, %v1606_v33 }
 0x36d   :  { %807 = vst [vmem:[#allocation2 + $0x38] sm:$0xff] %v791_v22  ;;  %v779_v0 = vmul.f32 %v1613_v60, %v759_v44 }
 0x36f   :  { %v799_v27 = vadd.f32 %v1619_v14, %v779_v0 }
 0x371   :  { %815 = vst [vmem:[#allocation2 + $0x78] sm:$0xff] %v799_v27 }
 0x372   :  { %1071 = shalt.err (!%p1068_p4)
}
 0x373   :  { %s1083_s18 = smov 128   ;;  %s1084_s19 = smov 8  }
 0x374   :  { %829 = dma.vmem_to_hbm [thread:$0]  %s824_s16, 2048, %s1676_s5, [#allocation3], %s1083_s18, %s1083_s18, %s1084_s19  }
 0x375   :  { %1080 = dma.done.wait [#allocation3], 2048  }
 0x376   :  { %1081 = vsyncadd [#allocation3], 4294965248 }
 0x377   :  { %835 = vsyncpa [#allocation3], 1 }

// kernel: mamba_block_forward.3
= control target key start
LH: loop header
LB: loop body
LE: loop exit
PB: predicated region body
PF: predicated region fallthrough
CT: control target
= control target key end

     0   :  { %s2335_s0 = inlined_call_operand.vmem [shape: f32[16,1024], index: 0, kind: input, shape index: {}]   ;;  %s2336_s1 = inlined_call_operand.vmem [shape: f32[2,1024], index: 1, kind: input, shape index: {}]   ;;  %s2337_s2 = inlined_call_operand.vmem [shape: bf16[1024,256], index: 2, kind: input, shape index: {}]   ;;  %s2338_s3 = inlined_call_operand.vmem [shape: f32[2,256], index: 3, kind: input, shape index: {}]   ;;  %s2339_s4 = inlined_call_operand.hbm [shape: f32[16,256], index: 4, kind: output, shape index: {0}]   ;;  %s2340_s5 = inlined_call_operand.vmem [shape: f32[16,256], index: 5, kind: output, shape index: {1}]  }
   0x1   :  { %v1679_v0 = vld [vmem:[%s2335_s0] sm:$0xff]  ;;  %v1684_v1 = vld [vmem:[%s2335_s0 + $0x8] sm:$0xff]  ;;  %v1689_v2 = vld [vmem:[%s2335_s0 + $0x10] sm:$0xff] }
   0x2   :  { %v39_v3 = vadd.f32 %v1684_v1, %v1679_v0  ;;  %v1696_v4 = vld [vmem:[%s2335_s0 + $0x18] sm:$0xff]  ;;  %v1701_v5 = vld [vmem:[%s2335_s0 + $0x40] sm:$0xff]  ;;  %v1707_v7 = vld [vmem:[%s2335_s0 + $0x48] sm:$0xff] }
   0x3   :  { %v1712_v8 = vld [vmem:[%s2335_s0 + $0x50] sm:$0xff]  ;;  %v1717_v9 = vld [vmem:[%s2335_s0 + $0x20] sm:$0xff]  ;;  %v1722_v10 = vld [vmem:[%s2335_s0 + $0x28] sm:$0xff]  ;;  %v48_v12 = vadd.f32 %v1707_v7, %v1701_v5 }
   0x4   :  { %v40_v6 = vadd.f32 %v39_v3, %v1689_v2  ;;  %v1727_v11 = vld [vmem:[%s2335_s0 + $0x58] sm:$0xff]  ;;  %v1735_v14 = vld [vmem:[%s2335_s0 + $0x60] sm:$0xff]  ;;  %v1740_v15 = vld [vmem:[%s2335_s0 + $0x30] sm:$0xff] }
   0x5   :  { %v49_v16 = vadd.f32 %v48_v12, %v1712_v8  ;;  %v1747_v18 = vld [vmem:[%s2335_s0 + $0x68] sm:$0xff]  ;;  %v1752_v19 = vld [vmem:[%s2335_s0 + $0x38] sm:$0xff]  ;;  %v1759_v22 = vld [vmem:[%s2335_s0 + $0x70] sm:$0xff] }
   0x6   :  { %v41_v13 = vadd.f32 %v40_v6, %v1696_v4  ;;  %v1766_v25 = vld [vmem:[%s2335_s0 + $0x78] sm:$0xff] }
   0x7   :  { %v50_v20 = vadd.f32 %v49_v16, %v1727_v11 }
   0x8   :  { %v42_v17 = vadd.f32 %v41_v13, %v1717_v9 }
   0x9   :  { %v51_v23 = vadd.f32 %v50_v20, %v1735_v14 }
   0xa   :  { %v43_v21 = vadd.f32 %v42_v17, %v1722_v10 }
   0xb   :  { %v52_v26 = vadd.f32 %v51_v23, %v1747_v18 }
   0xc   :  { %v44_v24 = vadd.f32 %v43_v21, %v1740_v15 }
   0xd   :  { %v53_v28 = vadd.f32 %v52_v26, %v1759_v22 }
   0xe   :  { %v45_v27 = vadd.f32 %v44_v24, %v1752_v19 }
   0xf   :  { %v54_v29 = vadd.f32 %v53_v28, %v1766_v25 }
  0x10   :  { %46 = vadd.xlane.f32.xlu0 %v45_v27 }
  0x14   :  { %55 = vadd.xlane.f32.xlu0 %v54_v29 }
  0x15   :  { %11 = vsyncpa [#allocation3], 0  ;;  %v1421_v30 = vld [vmem:[%s2337_s2 + $0x74] ss:$8 sps:$4 sm:$0xff]   ;;  %v1425_v32 = vld [vmem:[%s2337_s2 + $0x70] ss:$8 sps:$4 sm:$0xff]  }
  0x16   :  { %v1423_v31 = vld [vmem:[%s2337_s2 + $0x174] ss:$8 sps:$4 sm:$0xff]   ;;  %v1426_v33 = vld [vmem:[%s2337_s2 + $0x170] ss:$8 sps:$4 sm:$0xff]   ;;  %v1427_v34 = vld [vmem:[%s2337_s2 + $0x64] ss:$8 sps:$4 sm:$0xff]   ;;  %1022 = vmatprep.subr.bf16.mxu0 %v1421_v30 }
  0x17   :  { %v1429_v35 = vld [vmem:[%s2337_s2 + $0x164] ss:$8 sps:$4 sm:$0xff]   ;;  %1065 = vmatprep.subr.bf16.mxu1 %v1423_v31  ;;  %1023 = vmatpush1.bf16.msra.mxu0 %v1425_v32  ;;  %v1431_v36 = vld [vmem:[%s2337_s2 + $0x60] ss:$8 sps:$4 sm:$0xff]   ;;  %v1433_v38 = vld [vmem:[%s2337_s2 + $0x54] ss:$8 sps:$4 sm:$0xff]  }
  0x18   :  { %1066 = vmatpush1.bf16.msra.mxu1 %v1426_v33  ;;  %v1432_v37 = vld [vmem:[%s2337_s2 + $0x160] ss:$8 sps:$4 sm:$0xff]   ;;  %1024 = vmatprep.subr.bf16.mxu0 %v1427_v34  ;;  %v1435_v39 = vld [vmem:[%s2337_s2 + $0x154] ss:$8 sps:$4 sm:$0xff]   ;;  %v1437_v40 = vld [vmem:[%s2337_s2 + $0x50] ss:$8 sps:$4 sm:$0xff]  }
  0x19   :  { %1067 = vmatprep.subr.bf16.mxu1 %v1429_v35  ;;  %v1438_v41 = vld [vmem:[%s2337_s2 + $0x150] ss:$8 sps:$4 sm:$0xff]   ;;  %v1439_v42 = vld [vmem:[%s2337_s2 + $0x44] ss:$8 sps:$4 sm:$0xff]   ;;  %v1443_v44 = vld [vmem:[%s2337_s2 + $0x40] ss:$8 sps:$4 sm:$0xff]  }
  0x1a   :  { %v1441_v43 = vld [vmem:[%s2337_s2 + $0x144] ss:$8 sps:$4 sm:$0xff]   ;;  %v1444_v45 = vld [vmem:[%s2337_s2 + $0x140] ss:$8 sps:$4 sm:$0xff]   ;;  %v1445_v46 = vld [vmem:[%s2337_s2 + $0x34] ss:$8 sps:$4 sm:$0xff]  }
  0x1b   :  { %1025 = vmatpush1.bf16.msra.mxu0 %v1431_v36  ;;  %v1447_v47 = vld [vmem:[%s2337_s2 + $0x134] ss:$8 sps:$4 sm:$0xff]   ;;  %v1449_v48 = vld [vmem:[%s2337_s2 + $0x30] ss:$8 sps:$4 sm:$0xff]   ;;  %v1451_v50 = vld [vmem:[%s2337_s2 + $0x24] ss:$8 sps:$4 sm:$0xff]  }
  0x1c   :  { %1068 = vmatpush1.bf16.msra.mxu1 %v1432_v37  ;;  %1026 = vmatprep.subr.bf16.mxu0 %v1433_v38  ;;  %v1450_v49 = vld [vmem:[%s2337_s2 + $0x130] ss:$8 sps:$4 sm:$0xff]   ;;  %v1453_v51 = vld [vmem:[%s2337_s2 + $0x124] ss:$8 sps:$4 sm:$0xff]   ;;  %v1455_v52 = vld [vmem:[%s2337_s2 + $0x20] ss:$8 sps:$4 sm:$0xff]  }
  0x1d   :  { %1069 = vmatprep.subr.bf16.mxu1 %v1435_v39  ;;  %v1456_v53 = vld [vmem:[%s2337_s2 + $0x120] ss:$8 sps:$4 sm:$0xff]   ;;  %v1457_v54 = vld [vmem:[%s2337_s2 + $0x14] ss:$8 sps:$4 sm:$0xff]   ;;  %v1461_v56 = vld [vmem:[%s2337_s2 + $0x10] ss:$8 sps:$4 sm:$0xff]  }
  0x1e   :  { %v1459_v55 = vld [vmem:[%s2337_s2 + $0x114] ss:$8 sps:$4 sm:$0xff]   ;;  %v1462_v57 = vld [vmem:[%s2337_s2 + $0x110] ss:$8 sps:$4 sm:$0xff]   ;;  %v1463_v58 = vld [vmem:[%s2337_s2 + $0x4] ss:$8 sps:$4 sm:$0xff]  }
  0x1f   :  { %1027 = vmatpush1.bf16.msra.mxu0 %v1437_v40  ;;  %v1465_v59 = vld [vmem:[%s2337_s2 + $0x104] ss:$8 sps:$4 sm:$0xff]   ;;  %v1467_v60 = vld [vmem:[%s2337_s2] ss:$8 sps:$4 sm:$0xff]   ;;  %v1469_v62 = vld [vmem:[%s2337_s2 + $0xf4] ss:$8 sps:$4 sm:$0xff]  }
  0x20   :  { %1070 = vmatpush1.bf16.msra.mxu1 %v1438_v41  ;;  %1028 = vmatprep.subr.bf16.mxu0 %v1439_v42  ;;  %v1468_v61 = vld [vmem:[%s2337_s2 + $0x100] ss:$8 sps:$4 sm:$0xff]   ;;  %v1471_v63 = vld [vmem:[%s2337_s2 + $0x1f4] ss:$8 sps:$4 sm:$0xff]   ;;  %v1473_v3 = vld [vmem:[%s2337_s2 + $0xf0] ss:$8 sps:$4 sm:$0xff]  }
  0x21   :  { %1071 = vmatprep.subr.bf16.mxu1 %v1441_v43  ;;  %v1474_v6 = vld [vmem:[%s2337_s2 + $0x1f0] ss:$8 sps:$4 sm:$0xff]  }
  0x23   :  { %1029 = vmatpush1.bf16.msra.mxu0 %v1443_v44 }
  0x24   :  { %1072 = vmatpush1.bf16.msra.mxu1 %v1444_v45  ;;  %1030 = vmatprep.subr.bf16.mxu0 %v1445_v46 }
  0x25   :  { %1073 = vmatprep.subr.bf16.mxu1 %v1447_v47 }
  0x27   :  { %1031 = vmatpush1.bf16.msra.mxu0 %v1449_v48 }
  0x28   :  { %1074 = vmatpush1.bf16.msra.mxu1 %v1450_v49  ;;  %1032 = vmatprep.subr.bf16.mxu0 %v1451_v50 }
  0x29   :  { %1075 = vmatprep.subr.bf16.mxu1 %v1453_v51 }
  0x2b   :  { %1033 = vmatpush1.bf16.msra.mxu0 %v1455_v52 }
  0x2c   :  { %1076 = vmatpush1.bf16.msra.mxu1 %v1456_v53  ;;  %1034 = vmatprep.subr.bf16.mxu0 %v1457_v54  ;;  %v1477_v53 = vld [vmem:[%s2337_s2 + $0x1e4] ss:$8 sps:$4 sm:$0xff]   ;;  %v1479_v54 = vld [vmem:[%s2337_s2 + $0xe0] ss:$8 sps:$4 sm:$0xff]  }
  0x2d   :  { %1077 = vmatprep.subr.bf16.mxu1 %v1459_v55  ;;  %v1480_v55 = vld [vmem:[%s2337_s2 + $0x1e0] ss:$8 sps:$4 sm:$0xff]  }
  0x2f   :  { %1035 = vmatpush1.bf16.msra.mxu0 %v1461_v56  ;;  %v1481_v56 = vld [vmem:[%s2337_s2 + $0xd4] ss:$8 sps:$4 sm:$0xff]  }
  0x30   :  { %1078 = vmatpush1.bf16.msra.mxu1 %v1462_v57  ;;  %1036 = vmatprep.subr.bf16.mxu0 %v1463_v58  ;;  %v1483_v57 = vld [vmem:[%s2337_s2 + $0x1d4] ss:$8 sps:$4 sm:$0xff]   ;;  %v1485_v58 = vld [vmem:[%s2337_s2 + $0xd0] ss:$8 sps:$4 sm:$0xff]  }
  0x31   :  { %1079 = vmatprep.subr.bf16.mxu1 %v1465_v59  ;;  %v1486_v59 = vld [vmem:[%s2337_s2 + $0x1d0] ss:$8 sps:$4 sm:$0xff]  }
  0x33   :  { %1037 = vmatpush1.bf16.msra.mxu0 %v1467_v60  ;;  %v1487_v60 = vld [vmem:[%s2337_s2 + $0xc4] ss:$8 sps:$4 sm:$0xff]  }
  0x34   :  { %1080 = vmatpush1.bf16.msra.mxu1 %v1468_v61  ;;  %1038 = vmatprep.subr.bf16.mxu0 %v1469_v62  ;;  %v1489_v61 = vld [vmem:[%s2337_s2 + $0x1c4] ss:$8 sps:$4 sm:$0xff]   ;;  %v1491_v62 = vld [vmem:[%s2337_s2 + $0xc0] ss:$8 sps:$4 sm:$0xff]  }
  0x35   :  { %1081 = vmatprep.subr.bf16.mxu1 %v1471_v63  ;;  %v1492_v63 = vld [vmem:[%s2337_s2 + $0x1c0] ss:$8 sps:$4 sm:$0xff]  }
  0x37   :  { %1039 = vmatpush2.bf16.msra.mxu0 %v1473_v3  ;;  %v1493_v3 = vld [vmem:[%s2337_s2 + $0xb4] ss:$8 sps:$4 sm:$0xff]  }
  0x38   :  { %1082 = vmatpush2.bf16.msra.mxu1 %v1474_v6  ;;  %v1495_v6 = vld [vmem:[%s2337_s2 + $0x1b4] ss:$8 sps:$4 sm:$0xff]  }
  0x39   :  { %1083 = vmatprep.subr.bf16.mxu1 %v1477_v53 }
  0x3c   :  { %1084 = vmatpush2.bf16.msra.mxu1 %v1480_v55 }
  0x3d   :  { %1085 = vmatprep.subr.bf16.mxu1 %v1483_v57 }
  0x40   :  { %1086 = vmatpush2.bf16.msra.mxu1 %v1486_v59 }
  0x41   :  { %1087 = vmatprep.subr.bf16.mxu1 %v1489_v61 }
  0x44   :  { %1088 = vmatpush2.bf16.msra.mxu1 %v1492_v63 }
  0x45   :  { %1089 = vmatprep.subr.bf16.mxu1 %v1495_v6 }
  0x99   :  { %v47_v12 = vpop.xlane.xlu0 %46 }
  0x9a   :  { %v58_v13 = vmul.f32 0.0009765625, %v47_v12  ;;  %v1497_v12 = vld [vmem:[%s2337_s2 + $0xb0] ss:$8 sps:$4 sm:$0xff]  }
  0x9c   :  { %v1881_v16 = vsub.f32 %v1679_v0, %v58_v13  ;;  %v1884_v17 = vsub.f32 %v1684_v1, %v58_v13  ;;  %v1887_v20 = vsub.f32 %v1689_v2, %v58_v13  ;;  %v1890_v24 = vsub.f32 %v1696_v4, %v58_v13 }
  0x9d   :  { %v56_v21 = vpop.xlane.xlu0 %55  ;;  %v1897_v0 = vsub.f32 %v1717_v9, %v58_v13  ;;  %v1911_v30 = vsub.f32 %v1722_v10, %v58_v13 }
  0x9e   :  { %v59_v23 = vmul.f32 0.0009765625, %v56_v21  ;;  %v76_v26 = vmul.f32 %v1881_v16, %v1881_v16  ;;  %v77_v27 = vmul.f32 %v1884_v17, %v1884_v17  ;;  %v78_v1 = vmul.f32 %v1887_v20, %v1887_v20  ;;  %v1499_v21 = vld [vmem:[%s2337_s2 + $0xa4] ss:$8 sps:$4 sm:$0xff]  }
  0x9f   :  { %v79_v9 = vmul.f32 %v1890_v24, %v1890_v24  ;;  %v81_v37 = vmul.f32 %v1911_v30, %v1911_v30 }
  0xa0   :  { %v92_v28 = vadd.f32 %v77_v27, %v76_v26  ;;  %v1902_v2 = vsub.f32 %v1701_v5, %v59_v23  ;;  %v1905_v29 = vsub.f32 %v1707_v7, %v59_v23  ;;  %v1908_v4 = vsub.f32 %v1712_v8, %v59_v23  ;;  %v1503_v27 = vld [vmem:[%s2337_s2 + $0xa0] ss:$8 sps:$4 sm:$0xff]  }
  0xa1   :  { %v1918_v33 = vsub.f32 %v1727_v11, %v59_v23  ;;  %v1923_v7 = vsub.f32 %v1740_v15, %v58_v13  ;;  %v80_v8 = vmul.f32 %v1897_v0, %v1897_v0  ;;  %v1928_v34 = vsub.f32 %v1735_v14, %v59_v23 }
  0xa2   :  { %v93_v31 = vadd.f32 %v92_v28, %v78_v1  ;;  %v84_v32 = vmul.f32 %v1902_v2, %v1902_v2  ;;  %v85_v5 = vmul.f32 %v1905_v29, %v1905_v29  ;;  %v86_v35 = vmul.f32 %v1908_v4, %v1908_v4  ;;  %v1504_v1 = vld [vmem:[%s2337_s2 + $0x1a0] ss:$8 sps:$4 sm:$0xff]  }
  0xa3   :  { %v1933_v11 = vsub.f32 %v1752_v19, %v58_v13  ;;  %v1938_v15 = vsub.f32 %v1747_v18, %v59_v23  ;;  %v87_v39 = vmul.f32 %v1918_v33, %v1918_v33  ;;  %v82_v14 = vmul.f32 %v1923_v7, %v1923_v7  ;;  %v1498_v13 = vld [vmem:[%s2337_s2 + $0x1b0] ss:$8 sps:$4 sm:$0xff]  }
  0xa4   :  { %v94_v10 = vadd.f32 %v93_v31, %v79_v9  ;;  %v101_v36 = vadd.f32 %v85_v5, %v84_v32  ;;  %v1945_v42 = vsub.f32 %v1759_v22, %v59_v23  ;;  %v88_v19 = vmul.f32 %v1928_v34, %v1928_v34  ;;  %1090 = vmatpush2.bf16.msra.mxu1 %v1498_v13  ;;  %v1505_v9 = vld [vmem:[%s2337_s2 + $0x94] ss:$8 sps:$4 sm:$0xff]   ;;  %v1509_v32 = vld [vmem:[%s2337_s2 + $0x90] ss:$8 sps:$4 sm:$0xff]   ;;  %v36_v5 = vld [vmem:[%s2336_s1] ss:$2 sm:$0xff] }
  0xa5   :  { %v83_v44 = vmul.f32 %v1933_v11, %v1933_v11  ;;  %v1952_v45 = vsub.f32 %v1766_v25, %v59_v23  ;;  %v89_v46 = vmul.f32 %v1938_v15, %v1938_v15  ;;  %v1475_v25 = vld [vmem:[%s2337_s2 + $0xe4] ss:$8 sps:$4 sm:$0xff]   ;;  %v133_v26 = vlaneseq  ;;  %v1507_v31 = vld [vmem:[%s2337_s2 + $0x194] ss:$8 sps:$4 sm:$0xff]  }
  0xa6   :  { %v95_v38 = vadd.f32 %v94_v10, %v80_v8  ;;  %v102_v40 = vadd.f32 %v101_v36, %v86_v35  ;;  %v90_v22 = vmul.f32 %v1945_v42, %v1945_v42  ;;  %1040 = vmatprep.subr.bf16.mxu0 %v1475_v25  ;;  %v1501_v23 = vld [vmem:[%s2337_s2 + $0x1a4] ss:$8 sps:$4 sm:$0xff]   ;;  %v1510_v8 = vld [vmem:[%s2337_s2 + $0x190] ss:$8 sps:$4 sm:$0xff]  }
  0xa7   :  { %v91_v50 = vmul.f32 %v1952_v45, %v1952_v45  ;;  %1041 = vmatpush2.bf16.msra.mxu0 %v1479_v54  ;;  %v2020_v28 = vshrl.u32 %v133_v26, 7  ;;  %1091 = vmatprep.subr.bf16.mxu1 %v1501_v23  ;;  %v1288_v10 = vld [vmem:[%s2336_s1 + $0x1] ss:$2 sm:$0xff] }
  0xa8   :  { %v96_v41 = vadd.f32 %v95_v38, %v81_v37  ;;  %v103_v43 = vadd.f32 %v102_v40, %v87_v39  ;;  %1042 = vmatprep.subr.bf16.mxu0 %v1481_v56  ;;  %1092 = vmatpush2.bf16.msra.mxu1 %v1504_v1  ;;  %v1511_v36 = vld [vmem:[%s2337_s2 + $0x84] ss:$8 sps:$4 sm:$0xff]  }
  0xa9   :  { %v151_v35 = vsub.s32 4, %v2020_v28  ;;  %1093 = vmatprep.subr.bf16.mxu1 %v1507_v31  ;;  %v1513_v37 = vld [vmem:[%s2337_s2 + $0x184] ss:$8 sps:$4 sm:$0xff]   ;;  %v159_v38 = vsub.s32 6, %v2020_v28  ;;  %v2073_v25 = vsub.s32 0, %v2020_v28  ;;  %v143_v53 = vsub.s32 2, %v2020_v28 }
  0xaa   :  { %v97_v18 = vadd.f32 %v96_v41, %v82_v14  ;;  %v104_v47 = vadd.f32 %v103_v43, %v88_v19  ;;  %v1515_v41 = vld [vmem:[%s2337_s2 + $0x80] ss:$8 sps:$4 sm:$0xff]   ;;  %v155_v54 = vsub.s32 5, %v2020_v28  ;;  %v163_v55 = vsub.s32 7, %v2020_v28 }
  0xab   :  { %1043 = vmatpush2.bf16.msra.mxu0 %v1485_v58  ;;  %v2048_v39 = vrot.slane %v36_v5, %v151_v35  ;;  %v2050_v40 = vrot.slane %v1288_v10, %v151_v35  ;;  %v2052_v14 = vrot.slane %v36_v5, %v159_v38  ;;  %v1516_v19 = vld [vmem:[%s2337_s2 + $0x180] ss:$8 sps:$4 sm:$0xff]   ;;  %v2060_v43 = vrot.slane %v1288_v10, %v159_v38 }
  0xac   :  { %v98_v48 = vadd.f32 %v97_v18, %v83_v44  ;;  %v105_v49 = vadd.f32 %v104_v47, %v89_v46  ;;  %1044 = vmatprep.subr.bf16.mxu0 %v1487_v60  ;;  %1094 = vmatpush2.bf16.msra.mxu1 %v1510_v8  ;;  %v1519_v44 = vld [vmem:[%s2337_s2 + $0x274] ss:$8 sps:$4 sm:$0xff]   ;;  %v136_v58 = vrot.slane %v36_v5, %v2073_v25 }
  0xad   :  { %1095 = vmatprep.subr.bf16.mxu1 %v1513_v37  ;;  %v1522_v18 = vld [vmem:[%s2337_s2 + $0x374] ss:$8 sps:$4 sm:$0xff]   ;;  %v144_v60 = vrot.slane %v36_v5, %v143_v53  ;;  %v156_v61 = vrot.slane %v36_v5, %v155_v54  ;;  %v193_v6 = vrot.slane %v1288_v10, %v2073_v25  ;;  %v213_v13 = vrot.slane %v1288_v10, %v155_v54 }
  0xae   :  { %99 = vadd.xlane.f32.xlu1 %v98_v48  ;;  %v106_v51 = vadd.f32 %v105_v49, %v90_v22 }
  0xaf   :  { %1045 = vmatpush2.bf16.msra.mxu0 %v1491_v62  ;;  %v164_v62 = vrot.slane %v36_v5, %v163_v55 }
  0xb0   :  { %v107_v52 = vadd.f32 %v106_v51, %v91_v50  ;;  %1046 = vmatprep.subr.bf16.mxu0 %v1493_v3  ;;  %1096 = vmatpush2.bf16.msra.mxu1 %v1516_v19  ;;  %v2069_v51 = vsub.s32 1, %v2020_v28 }
  0xb1   :  { %1151 = vmatprep.subr.bf16.mxu1 %v1522_v18 }
  0xb2   :  { %108 = vadd.xlane.f32.xlu1 %v107_v52  ;;  %v147_v52 = vsub.s32 3, %v2020_v28  ;;  %v140_v56 = vrot.slane %v36_v5, %v2069_v51  ;;  %v197_v59 = vrot.slane %v1288_v10, %v2069_v51 }
  0xb3   :  { %1047 = vmatpush2.bf16.msra.mxu0 %v1497_v12  ;;  %v201_v12 = vrot.slane %v1288_v10, %v143_v53 }
  0xb4   :  { %1048 = vmatprep.subr.bf16.mxu0 %v1499_v21  ;;  %v148_v57 = vrot.slane %v36_v5, %v147_v52  ;;  %v205_v3 = vrot.slane %v1288_v10, %v147_v52 }
  0xb7   :  { %1049 = vmatpush2.bf16.msra.mxu0 %v1503_v27 }
  0xb8   :  { %1050 = vmatprep.subr.bf16.mxu0 %v1505_v9 }
  0xbb   :  { %1051 = vmatpush2.bf16.msra.mxu0 %v1509_v32 }
  0xbc   :  { %1052 = vmatprep.subr.bf16.mxu0 %v1511_v36 }
  0xbf   :  { %1053 = vmatpush2.bf16.msra.mxu0 %v1515_v41 }
  0xc0   :  { %1108 = vmatprep.subr.bf16.mxu0 %v1519_v44 }
 0x137   :  { %v100_v46 = vpop.xlane.xlu1 %99 }
 0x138   :  { %v110_v47 = vmul.f32 0.0009765625, %v100_v46 }
 0x13a   :  { %v112_v48 = vadd.f32 1e-05, %v110_v47 }
 0x13b   :  { %v109_v22 = vpop.xlane.xlu1 %108 }
 0x13c   :  { %1613 = vrsqrt.f32 %v112_v48  ;;  %v111_v49 = vmul.f32 0.0009765625, %v109_v22 }
 0x13e   :  { %v113_v50 = vadd.f32 1e-05, %v111_v49 }
 0x140   :  { %1615 = vrsqrt.f32 %v113_v50 }
 0x149   :  { %v1614_v63 = vpop.eup %1613 }
 0x14a   :  { %v117_v21 = vmul.f32 %v1614_v63, %v1884_v17  ;;  %v119_v23 = vmul.f32 %v1614_v63, %v1890_v24  ;;  %v116_v26 = vmul.f32 %v1614_v63, %v1881_v16  ;;  %v118_v27 = vmul.f32 %v1614_v63, %v1887_v20 }
 0x14b   :  { %v121_v1 = vmul.f32 %v1614_v63, %v1911_v30  ;;  %v123_v28 = vmul.f32 %v1614_v63, %v1933_v11  ;;  %v120_v9 = vmul.f32 %v1614_v63, %v1897_v0  ;;  %v122_v31 = vmul.f32 %v1614_v63, %v1923_v7 }
 0x14c   :  { %v174_v32 = vmul.f32 %v140_v56, %v117_v21  ;;  %v176_v5 = vmul.f32 %v148_v57, %v119_v23  ;;  %v173_v8 = vmul.f32 %v136_v58, %v116_v26  ;;  %v175_v35 = vmul.f32 %v144_v60, %v118_v27  ;;  %v1523_v21 = vld [vmem:[%s2337_s2 + $0x260] ss:$8 sps:$4 sm:$0xff]   ;;  %v1531_v26 = vld [vmem:[%s2337_s2 + $0x254] ss:$8 sps:$4 sm:$0xff]  }
 0x14d   :  { %v178_v36 = vmul.f32 %v156_v61, %v121_v1  ;;  %v221_v17 = vrot.slane %v1288_v10, %v163_v55  ;;  %v177_v24 = vmul.f32 %v2048_v39, %v120_v9  ;;  %v179_v16 = vmul.f32 %v2052_v14, %v122_v31  ;;  %v1616_v37 = vpop.eup %1615  ;;  %v1526_v23 = vld [vmem:[%s2337_s2 + $0x360] ss:$8 sps:$4 sm:$0xff]   ;;  %v1529_v1 = vld [vmem:[%s2337_s2 + $0x250] ss:$8 sps:$4 sm:$0xff]   ;;  %v1537_v9 = vld [vmem:[%s2337_s2 + $0x244] ss:$8 sps:$4 sm:$0xff]  }
 0x14e   :  { %v231_v20 = vadd.f32 %v197_v59, %v174_v32  ;;  %v233_v38 = vadd.f32 %v205_v3, %v176_v5  ;;  %v230_v30 = vadd.f32 %v193_v6, %v173_v8  ;;  %v180_v41 = vmul.f32 %v164_v62, %v123_v28  ;;  %v1532_v28 = vld [vmem:[%s2337_s2 + $0x350] ss:$8 sps:$4 sm:$0xff]   ;;  %v1540_v31 = vld [vmem:[%s2337_s2 + $0x344] ss:$8 sps:$4 sm:$0xff]   ;;  %v1535_v32 = vld [vmem:[%s2337_s2 + $0x240] ss:$8 sps:$4 sm:$0xff]  }
 0x14f   :  { %v125_v11 = vmul.f32 %v1616_v37, %v1905_v29  ;;  %v127_v0 = vmul.f32 %v1616_v37, %v1918_v33  ;;  %v124_v7 = vmul.f32 %v1616_v37, %v1902_v2  ;;  %v126_v19 = vmul.f32 %v1616_v37, %v1908_v4  ;;  %v1538_v5 = vld [vmem:[%s2337_s2 + $0x340] ss:$8 sps:$4 sm:$0xff]   ;;  %v1543_v8 = vld [vmem:[%s2337_s2 + $0x234] ss:$8 sps:$4 sm:$0xff]  }
 0x150   :  { %v232_v44 = vadd.f32 %v201_v12, %v175_v35  ;;  %v129_v10 = vmul.f32 %v1616_v37, %v1938_v15  ;;  %v235_v18 = vadd.f32 %v213_v13, %v178_v36  ;;  %v131_v46 = vmul.f32 %v1616_v37, %v1952_v45  ;;  %v1546_v35 = vld [vmem:[%s2337_s2 + $0x334] ss:$8 sps:$4 sm:$0xff]   ;;  %v1541_v36 = vld [vmem:[%s2337_s2 + $0x230] ss:$8 sps:$4 sm:$0xff]  }
 0x151   :  { %v182_v47 = vmul.f32 %v140_v56, %v125_v11  ;;  %v184_v48 = vmul.f32 %v148_v57, %v127_v0  ;;  %v181_v22 = vmul.f32 %v136_v58, %v124_v7  ;;  %v183_v49 = vmul.f32 %v144_v60, %v126_v19  ;;  %v1517_v58 = vld [vmem:[%s2337_s2 + $0x270] ss:$8 sps:$4 sm:$0xff]   ;;  %v1561_v0 = vld [vmem:[%s2337_s2 + $0x204] ss:$8 sps:$4 sm:$0xff]   ;;  %v1559_v19 = vld [vmem:[%s2337_s2 + $0x200] ss:$8 sps:$4 sm:$0xff]  }
 0x152   :  { %v186_v50 = vmul.f32 %v156_v61, %v129_v10  ;;  %v188_v52 = vmul.f32 %v164_v62, %v131_v46  ;;  %v128_v29 = vmul.f32 %v1616_v37, %v1928_v34  ;;  %v2100_v33 = vadd.f32 %v2050_v40, %v177_v24  ;;  %v1520_v34 = vld [vmem:[%s2337_s2 + $0x370] ss:$8 sps:$4 sm:$0xff]   ;;  %v1549_v24 = vld [vmem:[%s2337_s2 + $0x224] ss:$8 sps:$4 sm:$0xff]   ;;  %v1567_v10 = vld [vmem:[%s2337_s2 + $0x2f4] ss:$8 sps:$4 sm:$0xff]  }
 0x153   :  { %v239_v2 = vadd.f32 %v197_v59, %v182_v47  ;;  %v241_v53 = vadd.f32 %v205_v3, %v184_v48  ;;  %v238_v4 = vadd.f32 %v193_v6, %v181_v22  ;;  %v240_v54 = vadd.f32 %v201_v12, %v183_v49  ;;  %v1525_v3 = vld [vmem:[%s2337_s2 + $0x264] ss:$8 sps:$4 sm:$0xff]   ;;  %v1556_v11 = vld [vmem:[%s2337_s2 + $0x310] ss:$8 sps:$4 sm:$0xff]   ;;  %v1571_v49 = vld [vmem:[%s2337_s2 + $0x2e0] ss:$8 sps:$4 sm:$0xff]  }
 0x154   :  { %v243_v55 = vadd.f32 %v213_v13, %v186_v50  ;;  %v245_v15 = vadd.f32 %v221_v17, %v188_v52  ;;  %v185_v63 = vmul.f32 %v2048_v39, %v128_v29  ;;  %v130_v45 = vmul.f32 %v1616_v37, %v1945_v42  ;;  %v1528_v6 = vld [vmem:[%s2337_s2 + $0x364] ss:$8 sps:$4 sm:$0xff]   ;;  %v1547_v37 = vld [vmem:[%s2337_s2 + $0x220] ss:$8 sps:$4 sm:$0xff]   ;;  %v1565_v46 = vld [vmem:[%s2337_s2 + $0x2f0] ss:$8 sps:$4 sm:$0xff]  }
 0x155   :  { %v247_v56 = vpack.c.bf16 %v239_v2, %v231_v20  ;;  %v249_v57 = vpack.c.bf16 %v241_v53, %v233_v38  ;;  %v246_v59 = vpack.c.bf16 %v238_v4, %v230_v30  ;;  %v248_v60 = vpack.c.bf16 %v240_v54, %v232_v44  ;;  %v1550_v20 = vld [vmem:[%s2337_s2 + $0x320] ss:$8 sps:$4 sm:$0xff]   ;;  %v1555_v38 = vld [vmem:[%s2337_s2 + $0x214] ss:$8 sps:$4 sm:$0xff]   ;;  %v1564_v7 = vld [vmem:[%s2337_s2 + $0x304] ss:$8 sps:$4 sm:$0xff]  }
 0x156   :  { %v237_v61 = vadd.f32 %v221_v17, %v180_v41  ;;  %v2111_v62 = vadd.f32 %v2050_v40, %v185_v63  ;;  %v187_v39 = vmul.f32 %v2052_v14, %v130_v45  ;;  %v251_v42 = vpack.c.bf16 %v243_v55, %v235_v18  ;;  %v1544_v17 = vld [vmem:[%s2337_s2 + $0x330] ss:$8 sps:$4 sm:$0xff]   ;;  %v1558_v30 = vld [vmem:[%s2337_s2 + $0x314] ss:$8 sps:$4 sm:$0xff]   ;;  %v1562_v44 = vld [vmem:[%s2337_s2 + $0x300] ss:$8 sps:$4 sm:$0xff]  }
 0x157   :  { %1054 = vmatprep.mubr.bf16.mxu0 %v247_v56  ;;  %1097 = vmatprep.mubr.bf16.mxu1 %v249_v57  ;;  %v2121_v12 = vadd.f32 %v2060_v43, %v179_v16  ;;  %v1552_v16 = vld [vmem:[%s2337_s2 + $0x324] ss:$8 sps:$4 sm:$0xff]   ;;  %v1553_v41 = vld [vmem:[%s2337_s2 + $0x210] ss:$8 sps:$4 sm:$0xff]   ;;  %v1570_v18 = vld [vmem:[%s2337_s2 + $0x3f4] ss:$8 sps:$4 sm:$0xff]  }
 0x158   :  { %1055 = vmatmul.mubr.bf16.vlgmr.msra.gmra.mxu0 %v246_v59  ;;  %1098 = vmatmul.mubr.bf16.vlgmr.msra.gmra.mxu1 %v248_v60  ;;  %v253_v40 = vpack.c.bf16 %v245_v15, %v237_v61  ;;  %v250_v14 = vpack.c.bf16 %v2111_v62, %v2100_v33  ;;  %v2126_v13 = vadd.f32 %v2060_v43, %v187_v39  ;;  %v1534_v43 = vld [vmem:[%s2337_s2 + $0x354] ss:$8 sps:$4 sm:$0xff]   ;;  %v1568_v47 = vld [vmem:[%s2337_s2 + $0x3f0] ss:$8 sps:$4 sm:$0xff]   ;;  %v1573_v48 = vld [vmem:[%s2337_s2 + $0x2e4] ss:$8 sps:$4 sm:$0xff]  }
 0x159   :  { %1109 = vmatpush1.bf16.msra.mxu0 %v1517_v58  ;;  %1152 = vmatpush1.bf16.msra.mxu1 %v1520_v34  ;;  %v1576_v22 = vld [vmem:[%s2337_s2 + $0x3e4] ss:$8 sps:$4 sm:$0xff]   ;;  %v1574_v50 = vld [vmem:[%s2337_s2 + $0x3e0] ss:$8 sps:$4 sm:$0xff]   ;;  %v1579_v52 = vld [vmem:[%s2337_s2 + $0x2d4] ss:$8 sps:$4 sm:$0xff]  }
 0x15a   :  { %1140 = vmatprep.mubr.bf16.mxu0 %v251_v42  ;;  %1183 = vmatprep.mubr.bf16.mxu1 %v253_v40  ;;  %v252_v27 = vpack.c.bf16 %v2126_v13, %v2121_v12  ;;  %v1582_v29 = vld [vmem:[%s2337_s2 + $0x3d4] ss:$8 sps:$4 sm:$0xff]   ;;  %v1577_v2 = vld [vmem:[%s2337_s2 + $0x2d0] ss:$8 sps:$4 sm:$0xff]   ;;  %v1585_v4 = vld [vmem:[%s2337_s2 + $0x2c4] ss:$8 sps:$4 sm:$0xff]  }
 0x15b   :  { %1110 = vmatprep.subr.bf16.mxu0 %v1525_v3  ;;  %1153 = vmatprep.subr.bf16.mxu1 %v1528_v6  ;;  %v1580_v53 = vld [vmem:[%s2337_s2 + $0x3d0] ss:$8 sps:$4 sm:$0xff]   ;;  %v1588_v54 = vld [vmem:[%s2337_s2 + $0x3c4] ss:$8 sps:$4 sm:$0xff]   ;;  %v1583_v55 = vld [vmem:[%s2337_s2 + $0x2c0] ss:$8 sps:$4 sm:$0xff]  }
 0x15c   :  { %v1586_v15 = vld [vmem:[%s2337_s2 + $0x3c0] ss:$8 sps:$4 sm:$0xff]   ;;  %v1591_v63 = vld [vmem:[%s2337_s2 + $0x2b4] ss:$8 sps:$4 sm:$0xff]   ;;  %v1589_v56 = vld [vmem:[%s2337_s2 + $0x2b0] ss:$8 sps:$4 sm:$0xff]  }
 0x15d   :  { %1111 = vmatpush1.bf16.msra.mxu0 %v1523_v21  ;;  %1154 = vmatpush1.bf16.msra.mxu1 %v1526_v23  ;;  %v1594_v45 = vld [vmem:[%s2337_s2 + $0x3b4] ss:$8 sps:$4 sm:$0xff]   ;;  %v1592_v57 = vld [vmem:[%s2337_s2 + $0x3b0] ss:$8 sps:$4 sm:$0xff]   ;;  %v1597_v58 = vld [vmem:[%s2337_s2 + $0x2a4] ss:$8 sps:$4 sm:$0xff]  }
 0x15e   :  { %1112 = vmatprep.subr.bf16.mxu0 %v1531_v26  ;;  %1155 = vmatprep.subr.bf16.mxu1 %v1534_v43  ;;  %v1600_v34 = vld [vmem:[%s2337_s2 + $0x3a4] ss:$8 sps:$4 sm:$0xff]   ;;  %v1595_v59 = vld [vmem:[%s2337_s2 + $0x2a0] ss:$8 sps:$4 sm:$0xff]   ;;  %v1603_v61 = vld [vmem:[%s2337_s2 + $0x294] ss:$8 sps:$4 sm:$0xff]  }
 0x15f   :  { %v1598_v60 = vld [vmem:[%s2337_s2 + $0x3a0] ss:$8 sps:$4 sm:$0xff]   ;;  %v1606_v39 = vld [vmem:[%s2337_s2 + $0x394] ss:$8 sps:$4 sm:$0xff]   ;;  %v1601_v42 = vld [vmem:[%s2337_s2 + $0x290] ss:$8 sps:$4 sm:$0xff]  }
 0x160   :  { %v1604_v3 = vld [vmem:[%s2337_s2 + $0x390] ss:$8 sps:$4 sm:$0xff]   ;;  %v1609_v6 = vld [vmem:[%s2337_s2 + $0x284] ss:$8 sps:$4 sm:$0xff]   ;;  %v1607_v21 = vld [vmem:[%s2337_s2 + $0x280] ss:$8 sps:$4 sm:$0xff]  }
 0x161   :  { %1113 = vmatpush1.bf16.msra.mxu0 %v1529_v1  ;;  %1156 = vmatpush1.bf16.msra.mxu1 %v1532_v28  ;;  %v1612_v40 = vld [vmem:[%s2337_s2 + $0x384] ss:$8 sps:$4 sm:$0xff]   ;;  %v1610_v23 = vld [vmem:[%s2337_s2 + $0x380] ss:$8 sps:$4 sm:$0xff]   ;;  %s1643_s2 = smov [#allocation2]  }
 0x162   :  { %1114 = vmatprep.subr.bf16.mxu0 %v1537_v9  ;;  %1157 = vmatprep.subr.bf16.mxu1 %v1540_v31  ;;  %s1273_s20 = sshll.u32 %s1643_s2, 4  ;;  %s1274_s20 = int_to_ptr.vmem [resolvable:$true] %s1273_s20 }
 0x163   :  { %s1621_s21 = scalar_lea.vmem %s1274_s20, 512  ;;  %p1626_p1 = scmp.lt.s32.totalorder %s1274_s20, %s1274_s20 }
 0x164   :  { %p1622_p0 = scmp.ne.s32.totalorder %s1274_s20, %s1621_s21  ;;  %p1627_p2 = scmp.lt.s32.totalorder %s1621_s21, %s1621_s21 }
 0x165   :  { %1115 = vmatpush1.bf16.msra.mxu0 %v1535_v32  ;;  %1158 = vmatpush1.bf16.msra.mxu1 %v1538_v5 }
 0x166   :  { %1116 = vmatprep.subr.bf16.mxu0 %v1543_v8  ;;  %1159 = vmatprep.subr.bf16.mxu1 %v1546_v35  ;;  %p1628_p3 = por %p1627_p2, %p1626_p1 }
 0x168   :  { %p1629_p4 = pnand %p1628_p3, %p1622_p0 }
 0x169   :  { %1117 = vmatpush1.bf16.msra.mxu0 %v1541_v36  ;;  %1160 = vmatpush1.bf16.msra.mxu1 %v1544_v17 }
 0x16a   :  { %1118 = vmatprep.subr.bf16.mxu0 %v1549_v24  ;;  %1161 = vmatprep.subr.bf16.mxu1 %v1552_v16 }
 0x16d   :  { %1119 = vmatpush1.bf16.msra.mxu0 %v1547_v37  ;;  %1162 = vmatpush1.bf16.msra.mxu1 %v1550_v20 }
 0x16e   :  { %1120 = vmatprep.subr.bf16.mxu0 %v1555_v38  ;;  %1163 = vmatprep.subr.bf16.mxu1 %v1558_v30 }
 0x171   :  { %1121 = vmatpush1.bf16.msra.mxu0 %v1553_v41  ;;  %1164 = vmatpush1.bf16.msra.mxu1 %v1556_v11 }
 0x172   :  { %1122 = vmatprep.subr.bf16.mxu0 %v1561_v0  ;;  %1165 = vmatprep.subr.bf16.mxu1 %v1564_v7 }
 0x175   :  { %1123 = vmatpush1.bf16.msra.mxu0 %v1559_v19  ;;  %1166 = vmatpush1.bf16.msra.mxu1 %v1562_v44 }
 0x176   :  { %1124 = vmatprep.subr.bf16.mxu0 %v1567_v10  ;;  %1167 = vmatprep.subr.bf16.mxu1 %v1570_v18 }
 0x179   :  { %1125 = vmatpush2.bf16.msra.mxu0 %v1565_v46  ;;  %1168 = vmatpush2.bf16.msra.mxu1 %v1568_v47 }
 0x17a   :  { %1126 = vmatprep.subr.bf16.mxu0 %v1573_v48  ;;  %1169 = vmatprep.subr.bf16.mxu1 %v1576_v22 }
 0x17d   :  { %1127 = vmatpush2.bf16.msra.mxu0 %v1571_v49  ;;  %1170 = vmatpush2.bf16.msra.mxu1 %v1574_v50 }
 0x17e   :  { %1128 = vmatprep.subr.bf16.mxu0 %v1579_v52  ;;  %1171 = vmatprep.subr.bf16.mxu1 %v1582_v29 }
 0x181   :  { %1129 = vmatpush2.bf16.msra.mxu0 %v1577_v2  ;;  %1172 = vmatpush2.bf16.msra.mxu1 %v1580_v53 }
 0x182   :  { %1130 = vmatprep.subr.bf16.mxu0 %v1585_v4  ;;  %1173 = vmatprep.subr.bf16.mxu1 %v1588_v54 }
 0x185   :  { %1131 = vmatpush2.bf16.msra.mxu0 %v1583_v55  ;;  %1174 = vmatpush2.bf16.msra.mxu1 %v1586_v15 }
 0x186   :  { %1132 = vmatprep.subr.bf16.mxu0 %v1591_v63  ;;  %1175 = vmatprep.subr.bf16.mxu1 %v1594_v45 }
 0x189   :  { %1133 = vmatpush2.bf16.msra.mxu0 %v1589_v56  ;;  %1176 = vmatpush2.bf16.msra.mxu1 %v1592_v57 }
 0x18a   :  { %1134 = vmatprep.subr.bf16.mxu0 %v1597_v58  ;;  %1177 = vmatprep.subr.bf16.mxu1 %v1600_v34 }
 0x18d   :  { %1135 = vmatpush2.bf16.msra.mxu0 %v1595_v59  ;;  %1178 = vmatpush2.bf16.msra.mxu1 %v1598_v60 }
 0x18e   :  { %1136 = vmatprep.subr.bf16.mxu0 %v1603_v61  ;;  %1179 = vmatprep.subr.bf16.mxu1 %v1606_v39 }
 0x191   :  { %1137 = vmatpush2.bf16.msra.mxu0 %v1601_v42  ;;  %1180 = vmatpush2.bf16.msra.mxu1 %v1604_v3 }
 0x192   :  { %1138 = vmatprep.subr.bf16.mxu0 %v1609_v6  ;;  %1181 = vmatprep.subr.bf16.mxu1 %v1612_v40 }
 0x195   :  { %1139 = vmatpush2.bf16.msra.mxu0 %v1607_v21  ;;  %1182 = vmatpush2.bf16.msra.mxu1 %v1610_v23 }
 0x198   :  { %1141 = vmatmul.mubr.bf16.vlgmr.msra.gmra.mxu0 %v250_v14  ;;  %1184 = vmatmul.mubr.bf16.vlgmr.msra.gmra.mxu1 %v252_v27 }
 0x218   :  { %v1056_v26 = vpop.f32.mrf.mxu0  ;;  %v1099_v43 = vpop.f32.mrf.mxu1 }
 0x219   :  { %v1100_v8 = vadd.f32 %v1099_v43, %v1056_v26 }
 0x21a   :  { %v1058_v1 = vpop.f32.mrf.mxu0  ;;  %v1101_v28 = vpop.f32.mrf.mxu1 }
 0x21b   :  { %v1102_v17 = vadd.f32 %v1101_v28, %v1058_v1 }
 0x21c   :  { %v1060_v9 = vpop.f32.mrf.mxu0  ;;  %v1103_v31 = vpop.f32.mrf.mxu1 }
 0x21d   :  { %v1104_v62 = vadd.f32 %v1103_v31, %v1060_v9 }
 0x21e   :  { %v1062_v32 = vpop.f32.mrf.mxu0  ;;  %v1105_v5 = vpop.f32.mrf.mxu1 }
 0x21f   :  { %v1106_v27 = vadd.f32 %v1105_v5, %v1062_v32 }
 0x258   :  { %v1142_v35 = vpop.f32.mrf.mxu0  ;;  %v1185_v36 = vpop.f32.mrf.mxu1 }
 0x259   :  { %v1143_v24 = vadd.f32 %v1142_v35, %v1100_v8 }
 0x25a   :  { %v1144_v16 = vpop.f32.mrf.mxu0  ;;  %v1187_v33 = vpop.f32.mrf.mxu1 }
 0x25b   :  { %v1186_v14 = vadd.f32 %v1185_v36, %v1143_v24  ;;  %v1145_v37 = vadd.f32 %v1144_v16, %v1102_v17 }
 0x25c   :  { %v1146_v12 = vpop.f32.mrf.mxu0  ;;  %v1189_v13 = vpop.f32.mrf.mxu1 }
 0x25d   :  { %1194 = vst [vmem:[#allocation2] sm:$0xff] %v1186_v14  ;;  %v1188_v20 = vadd.f32 %v1187_v33, %v1145_v37  ;;  %v1147_v38 = vadd.f32 %v1146_v12, %v1104_v62 }
 0x25e   :  { %v1148_v30 = vpop.f32.mrf.mxu0  ;;  %v1191_v7 = vpop.f32.mrf.mxu1 }
 0x25f   :  { %1195 = vst [vmem:[#allocation2 + $0x8] sm:$0xff] %v1188_v20  ;;  %v1190_v41 = vadd.f32 %v1189_v13, %v1147_v38  ;;  %v1149_v11 = vadd.f32 %v1148_v30, %v1106_v27  ;;  %v1201_v0 = vadd.f32 %v1188_v20, %v1186_v14 }
 0x261   :  { %1196 = vst [vmem:[#allocation2 + $0x10] sm:$0xff] %v1190_v41  ;;  %v1192_v19 = vadd.f32 %v1191_v7, %v1149_v11  ;;  %1202 = vadd.xlane.f32.xlu0 %v1201_v0 }
 0x263   :  { %1197 = vst [vmem:[#allocation2 + $0x18] sm:$0xff] %v1192_v19  ;;  %v1204_v44 = vadd.f32 %v1192_v19, %v1190_v41 }
 0x265   :  { %1205 = vadd.xlane.f32.xlu1 %v1204_v44 }
 0x2ea   :  { %v1203_v10 = vpop.xlane.xlu0 %1202 }
 0x2eb   :  { %v1208_v18 = vmul.f32 0.00390625, %v1203_v10 }
 0x2ed   :  { %v1210_v46 = vsub.f32 %v1186_v14, %v1208_v18  ;;  %v1211_v47 = vsub.f32 %v1188_v20, %v1208_v18 }
 0x2ee   :  { %v1206_v48 = vpop.xlane.xlu1 %1205 }
 0x2ef   :  { %v1209_v22 = vmul.f32 0.00390625, %v1206_v48  ;;  %v1214_v49 = vmul.f32 %v1210_v46, %v1210_v46  ;;  %v1215_v50 = vmul.f32 %v1211_v47, %v1211_v47 }
 0x2f1   :  { %v1212_v52 = vsub.f32 %v1190_v41, %v1209_v22  ;;  %v1213_v29 = vsub.f32 %v1192_v19, %v1209_v22  ;;  %v1218_v2 = vadd.f32 %v1215_v50, %v1214_v49 }
 0x2f3   :  { %1219 = vadd.xlane.f32.xlu0 %v1218_v2  ;;  %v1216_v53 = vmul.f32 %v1212_v52, %v1212_v52  ;;  %v1217_v4 = vmul.f32 %v1213_v29, %v1213_v29 }
 0x2f5   :  { %v1221_v54 = vadd.f32 %v1217_v4, %v1216_v53 }
 0x2f7   :  { %1222 = vadd.xlane.f32.xlu1 %v1221_v54 }
 0x2f8   :  { %1632 = shalt.err (!%p1629_p4)
}
 0x2f9   :  { %s1644_s22 = smov 256   ;;  %s1645_s1 = smov 16   ;;  %v1198_v58 = vld [vmem:[%s2338_s3] ss:$2 sm:$0x3] }
 0x2fa   :  { %1279 = dma.vmem_to_hbm [thread:$0]  %s1274_s20, 512, %s2339_s4, [#allocation3], %s1644_s22, %s1644_s22, %s1645_s1   ;;  %v1238_v59 = vrot.slane %v1198_v58, %v2073_v25  ;;  %v1242_v60 = vrot.slane %v1198_v58, %v2069_v51 }
 0x2fb   :  { %v1417_v34 = vld [vmem:[%s2338_s3 + $0x1] ss:$2 sm:$0x3] }
 0x2fc   :  { %v1257_v39 = vrot.slane %v1417_v34, %v2069_v51  ;;  %v1253_v42 = vrot.slane %v1417_v34, %v2073_v25 }
 0x37c   :  { %v1220_v55 = vpop.xlane.xlu0 %1219 }
 0x37d   :  { %v1224_v15 = vmul.f32 0.00390625, %v1220_v55 }
 0x37f   :  { %v1226_v63 = vadd.f32 1e-05, %v1224_v15 }
 0x380   :  { %v1223_v45 = vpop.xlane.xlu1 %1222 }
 0x381   :  { %1617 = vrsqrt.f32 %v1226_v63  ;;  %v1225_v56 = vmul.f32 0.00390625, %v1223_v45 }
 0x383   :  { %v1227_v57 = vadd.f32 1e-05, %v1225_v56 }
 0x385   :  { %1619 = vrsqrt.f32 %v1227_v57 }
 0x38e   :  { %v1618_v61 = vpop.eup %1617 }
 0x38f   :  { %v1230_v3 = vmul.f32 %v1618_v61, %v1210_v46  ;;  %v1231_v6 = vmul.f32 %v1618_v61, %v1211_v47 }
 0x391   :  { %v1245_v40 = vmul.f32 %v1238_v59, %v1230_v3  ;;  %v1246_v21 = vmul.f32 %v1242_v60, %v1231_v6 }
 0x392   :  { %v1620_v23 = vpop.eup %1619 }
 0x393   :  { %v1260_v26 = vadd.f32 %v1253_v42, %v1245_v40  ;;  %v1261_v43 = vadd.f32 %v1257_v39, %v1246_v21  ;;  %v1232_v1 = vmul.f32 %v1620_v23, %v1212_v52  ;;  %v1233_v28 = vmul.f32 %v1620_v23, %v1213_v29 }
 0x395   :  { %1264 = vst [vmem:[%s2340_s5] sm:$0xff] %v1260_v26  ;;  %1265 = vst [vmem:[%s2340_s5 + $0x8] sm:$0xff] %v1261_v43  ;;  %v1247_v51 = vmul.f32 %v1238_v59, %v1232_v1  ;;  %v1248_v9 = vmul.f32 %v1242_v60, %v1233_v28 }
 0x397   :  { %v1262_v25 = vadd.f32 %v1253_v42, %v1247_v51  ;;  %v1263_v31 = vadd.f32 %v1257_v39, %v1248_v9 }
 0x399   :  { %1266 = vst [vmem:[%s2340_s5 + $0x10] sm:$0xff] %v1262_v25  ;;  %1267 = vst [vmem:[%s2340_s5 + $0x18] sm:$0xff] %v1263_v31 }
 0x39a   :  { %1641 = dma.done.wait [#allocation3], 512  }
 0x39b   :  { %1642 = vsyncadd [#allocation3], 4294966784 }
 0x39c   :  { %1287 = vsyncpa [#allocation3], 1 }

</bundles_post_ra>
